<compile_context>
chip_gen: v6e
topology: v6e:2x2x1
jax: 0.10.0
libtpu: 0.0.40
codegen_flags: <defaults>
</compile_context>

<pallas_src>
import functools

import jax
import jax.numpy as jnp
from jax import lax
from jax.experimental import pallas as pl
from jax.experimental.pallas import tpu as pltpu


def _round_up(x: int, m: int) -> int:
    return (x + m - 1) // m * m


def _dc_gram_kernel(v_ref, t_ref, vtv_ref, ytv_ref, *,
                    num_classes, num_frames, tile_n, tiles_per_split,
                    need_mask):
    s = pl.program_id(0)
    k = pl.program_id(1)

    @pl.when(k == 0)
    def _():
        vtv_ref[...] = jnp.zeros_like(vtv_ref)
        ytv_ref[...] = jnp.zeros_like(ytv_ref)

    v = v_ref[...]                                   # (tile_n, D), native dtype
    t = t_ref[...]                                   # (1, tile_n) int32

    if need_mask:
        # Zero the rows of the ragged final tile that lie beyond N.  `where`
        # is a select (not a multiply), so stale NaN/Inf data in the padded
        # region of the partial block cannot leak into the Grams.
        row_start = (s * tiles_per_split + k) * tile_n
        rows = lax.broadcasted_iota(jnp.int32, (tile_n, 1), 0) + row_start
        v = jnp.where(rows < num_frames, v, jnp.zeros_like(v))

    # One-hot transposed: Y^T of shape (C, tile_n).  Out-of-range / garbage
    # labels give all-zero (or irrelevant, since V rows are zeroed) columns.
    classes = lax.broadcasted_iota(jnp.int32, (num_classes, tile_n), 0)
    yt = (classes == t).astype(v.dtype)              # (C, tile_n)

    # V^T V  (D, D): contract the frame axis of both operands.  Mosaic handles
    # the transposed-LHS contraction; the kernel is HBM-bound, so any relayout
    # it inserts overlaps the next tile's DMA.
    vtv = lax.dot_general(v, v, (((0,), (0,)), ((), ())),
                          preferred_element_type=jnp.float32)
    # Y^T V  (C, D): canonical MXU form (no in-kernel transpose needed).
    ytv = lax.dot_general(yt, v, (((1,), (0,)), ((), ())),
                          preferred_element_type=jnp.float32)

    vtv_ref[0] = vtv_ref[0] + vtv
    ytv_ref[0] = ytv_ref[0] + ytv


def deep_clustering_loss(output: jax.Array, target: jax.Array,
                         num_classes: int, *,
                         tile_n: int | None = None,
                         num_splits: int | None = None) -> jax.Array:
    """output: (N, D) float (f32 or bf16); target: (N,) int.  Scalar f32 loss.

    num_classes must be static.  (Torch infers max(target)+1 at runtime, but
    extra all-zero one-hot columns do not change any of the three Frobenius
    terms, so any static num_classes >= max(target)+1 gives the same loss.)
    """
    # TODO(synk): torch.nn.functional.one_hot's runtime num_classes inference
    # (and its error on out-of-range labels) has no jit-compatible equivalent;
    # a static num_classes is required here.
    n, d = output.shape
    dtype_bytes = jnp.dtype(output.dtype).itemsize

    kind = ""
    try:
        kind = jax.devices()[0].device_kind.lower()
    except Exception:
        pass
    is_v7 = "v7" in kind

    if num_splits is None:
        num_splits = 2 if is_v7 else 1      # split axis only pays off with 2 TCs

    # ---- frame-axis tiling: ~4 MiB per V buffer, rows a multiple of 128 ----
    if tile_n is None:
        tile_n = (4 << 20) // max(1, d * dtype_bytes)
    tile_n = max(128, (int(tile_n) // 128) * 128)
    tile_n = min(tile_n, _round_up(n, 128))          # never larger than needed

    total_tiles = -(-n // tile_n)
    num_splits = max(1, min(int(num_splits), total_tiles))
    while total_tiles % num_splits:                  # keep every grid step in bounds
        num_splits -= 1
    tiles_per_split = total_tiles // num_splits
    need_mask = total_tiles * tile_n != n            # static: ragged final tile?

    t2d = target.astype(jnp.int32).reshape(1, n)     # lane-dense targets (no pad)

    kernel = functools.partial(
        _dc_gram_kernel, num_classes=num_classes, num_frames=n,
        tile_n=tile_n, tiles_per_split=tiles_per_split, need_mask=need_mask)

    cost = pl.CostEstimate(
        flops=2 * n * d * (d + num_classes),
        transcendentals=0,
        bytes_accessed=(n * d * dtype_bytes + n * 4
                        + num_splits * 4 * (d * d + num_classes * d)),
    )

    # Double-buffered V tile + targets tile + resident accumulators + margin.
    vmem_need = (2 * tile_n * d * dtype_bytes + 2 * tile_n * 4
                 + 4 * 4 * (d * d + num_classes * d) + (4 << 20))
    vmem_cap = (56 if is_v7 else 100) * 1024 * 1024
    vmem_limit = int(min(vmem_cap, max(32 * 1024 * 1024, vmem_need)))

    vtv_p, ytv_p = pl.pallas_call(
        kernel,
        out_shape=(
            jax.ShapeDtypeStruct((num_splits, d, d), jnp.float32),
            jax.ShapeDtypeStruct((num_splits, num_classes, d), jnp.float32),
        ),
        grid=(num_splits, tiles_per_split),
        in_specs=[
            pl.BlockSpec((tile_n, d),
                         lambda s, k: (s * tiles_per_split + k, 0)),
            pl.BlockSpec((1, tile_n),
                         lambda s, k: (0, s * tiles_per_split + k)),
        ],
        out_specs=(
            pl.BlockSpec((1, d, d), lambda s, k: (s, 0, 0)),
            pl.BlockSpec((1, num_classes, d), lambda s, k: (s, 0, 0)),
        ),
        compiler_params=pltpu.CompilerParams(
            dimension_semantics=("parallel", "arbitrary"),
            vmem_limit_bytes=vmem_limit),
        cost_estimate=cost,
    )(output, t2d)

    # Tiny finalize in plain JAX: sum per-split partial Grams, then the
    # squared-Frobenius combination.  For one-hot Y, Y^T Y = diag(counts),
    # so ||Y^T Y||_F^2 = sum(counts^2); counts come from a cheap scatter-add
    # over the raw labels (out-of-range labels are dropped, matching the
    # all-zero one-hot-column behavior documented above).
    vtv = jnp.sum(vtv_p, axis=0)
    ytv = jnp.sum(ytv_p, axis=0)
    counts = jnp.zeros((num_classes,), jnp.float32).at[
        target.astype(jnp.int32)].add(1.0, mode="drop")
    loss = (jnp.sum(vtv * vtv) - 2.0 * jnp.sum(ytv * ytv)
            + jnp.sum(counts * counts))
    return loss / jnp.float32(n * n)


def _reference(output, target, num_classes):
    v = output.astype(jnp.float32)
    y = jax.nn.one_hot(target, num_classes, dtype=jnp.float32)
    n = output.shape[0]
    hp = lax.Precision.HIGHEST
    vtv = jnp.sum(jnp.square(jnp.matmul(v.T, v, precision=hp)))
    vty = jnp.sum(jnp.square(jnp.matmul(v.T, y, precision=hp)))
    yty = jnp.sum(jnp.square(jnp.matmul(y.T, y, precision=hp)))
    return (vtv - 2.0 * vty + yty) / (n * n)


if __name__ == "__main__":
    key = jax.random.PRNGKey(0)
    k_v, k_t = jax.random.split(key)

    num_frames = 1000      # N, not a multiple of 128 -> exercises the ragged-tile mask
    embed_dim = 32         # D
    num_classes = 4        # C

    output = jax.random.normal(k_v, (num_frames, embed_dim), dtype=jnp.float32)
    target = jax.random.randint(k_t, (num_frames,), 0, num_classes,
                                dtype=jnp.int32)

    ref = _reference(output, target, num_classes)

    # 1) Auto tiling path (single fat tile covering all frames, num_splits
    #    auto-detected from the TPU generation).
    loss = deep_clustering_loss(output, target, num_classes)
    loss = jax.block_until_ready(loss)
    assert jnp.allclose(loss, ref, rtol=1e-3, atol=1e-3), (loss, ref)

    # 2) Multi-tile reduction + requested split axis (exercises the resident
    #    accumulator across the "arbitrary" axis and the in-kernel row mask).
    loss2 = deep_clustering_loss(output, target, num_classes,
                                 tile_n=256, num_splits=2)
    loss2 = jax.block_until_ready(loss2)
    assert jnp.allclose(loss2, ref, rtol=1e-3, atol=1e-3), (loss2, ref)

    print("KERNEL_OK")
</pallas_src>

<mosaic_0001>
module attributes {stable_mosaic.version = 11 : i64} {
  func.func @_dc_gram_kernel(%arg0: i32, %arg1: i32, %arg2: memref<1024x32xf32, #tpu.memory_space<vmem>>, %arg3: memref<1x1024xi32, #tpu.memory_space<vmem>>, %arg4: memref<1x32x32xf32, #tpu.memory_space<vmem>>, %arg5: memref<1x4x32xf32, #tpu.memory_space<vmem>>) attributes {dimension_semantics = [#tpu.dimension_semantics<parallel>, #tpu.dimension_semantics<arbitrary>], iteration_bounds = array<i64: 1, 1>, scalar_prefetch = 0 : i64, scratch_operands = 0 : i64, tpu.core_type = #tpu.core_type<tc>, window_params = [{transform_indices = @transform_0, window_bounds = array<i64: 1024, 32>}, {transform_indices = @transform_1, window_bounds = array<i64: 1, 1024>}, {transform_indices = @transform_2, window_bounds = array<i64: 1, 32, 32>}, {transform_indices = @transform_3, window_bounds = array<i64: 1, 4, 32>}]} {
    %c0_i32 = arith.constant 0 : i32
    %0 = arith.cmpi eq, %arg1, %c0_i32 : i32
    %1 = arith.extui %0 : i1 to i32
    %c0_i32_0 = arith.constant 0 : i32
    %2 = arith.cmpi ne, %1, %c0_i32_0 : i32
    scf.if %2 {
      %cst_18 = arith.constant 0.000000e+00 : f32
      %36 = vector.broadcast %cst_18 : f32 to vector<1x32x32xf32>
      %c0_19 = arith.constant 0 : index
      %c0_20 = arith.constant 0 : index
      %c0_21 = arith.constant 0 : index
      %37 = vector.load %arg4[%c0_19, %c0_20, %c0_21] : memref<1x32x32xf32, #tpu.memory_space<vmem>>, vector<1x32x32xf32>
      tpu.vector_store %arg4[%c0_19, %c0_20, %c0_21], %36 {strides = array<i32>} : memref<1x32x32xf32, #tpu.memory_space<vmem>>, vector<1x32x32xf32>,
      %cst_22 = arith.constant 0.000000e+00 : f32
      %38 = vector.broadcast %cst_22 : f32 to vector<1x4x32xf32>
      %c0_23 = arith.constant 0 : index
      %c0_24 = arith.constant 0 : index
      %c0_25 = arith.constant 0 : index
      %39 = vector.load %arg5[%c0_23, %c0_24, %c0_25] : memref<1x4x32xf32, #tpu.memory_space<vmem>>, vector<1x4x32xf32>
      tpu.vector_store %arg5[%c0_23, %c0_24, %c0_25], %38 {strides = array<i32>} : memref<1x4x32xf32, #tpu.memory_space<vmem>>, vector<1x4x32xf32>,
    } else {
    }
    %c0 = arith.constant 0 : index
    %c0_1 = arith.constant 0 : index
    %3 = vector.load %arg2[%c0, %c0_1] : memref<1024x32xf32, #tpu.memory_space<vmem>>, vector<1024x32xf32>
    %c0_2 = arith.constant 0 : index
    %c0_3 = arith.constant 0 : index
    %4 = vector.load %arg3[%c0_2, %c0_3] : memref<1x1024xi32, #tpu.memory_space<vmem>>, vector<1x1024xi32>
    %c1_i32 = arith.constant 1 : i32
    %5 = arith.muli %arg0, %c1_i32 : i32
    %6 = arith.addi %5, %arg1 : i32
    %c1024_i32 = arith.constant 1024 : i32
    %7 = arith.muli %6, %c1024_i32 : i32
    %8 = tpu.iota {dimensions = array<i32: 0>} : vector<1024x1xi32>
    %9 = vector.broadcast %7 : i32 to vector<1024x1xi32>
    %10 = arith.addi %8, %9 : vector<1024x1xi32>
    %c1000_i32 = arith.constant 1000 : i32
    %11 = vector.broadcast %c1000_i32 : i32 to vector<1024x1xi32>
    %12 = arith.cmpi slt, %10, %11 : vector<1024x1xi32>
    %cst = arith.constant 0.000000e+00 : f32
    %13 = vector.broadcast %cst : f32 to vector<1024x32xf32>
    %14 = vector.shape_cast %12 : vector<1024x1xi1> to vector<1024x1xi1>
    %15 = vector.broadcast %14 : vector<1024x1xi1> to vector<1024x32xi1>
    %16 = arith.select %15, %3, %13 : vector<1024x32xi1>, vector<1024x32xf32>
    %17 = tpu.iota {dimensions = array<i32: 0>} : vector<4x1024xi32>
    %18 = vector.broadcast %4 : vector<1x1024xi32> to vector<4x1024xi32>
    %19 = arith.cmpi eq, %17, %18 : vector<4x1024xi32>
    %20 = arith.extui %19 : vector<4x1024xi1> to vector<4x1024xi32>
    %21 = arith.sitofp %20 : vector<4x1024xi32> to vector<4x1024xf32>
    %cst_4 = arith.constant dense<0.000000e+00> : vector<32x32xf32>
    %22 = tpu.matmul %16, %16, %cst_4 {dimension_numbers = #tpu.dot_dimension_numbers<[0], [0], [1], [1], [0, 1, 1, 1], [], []>} : vector<1024x32xf32>, vector<1024x32xf32>, vector<32x32xf32> -> vector<32x32xf32>
    %cst_5 = arith.constant dense<0.000000e+00> : vector<4x32xf32>
    %23 = tpu.matmul %21, %16, %cst_5 {dimension_numbers = #tpu.dot_dimension_numbers<[1], [0], [0], [1], [0, 0, 1, 1], [], []>} : vector<4x1024xf32>, vector<1024x32xf32>, vector<4x32xf32> -> vector<4x32xf32>
    %c0_6 = arith.constant 0 : index
    %c0_7 = arith.constant 0 : index
    %c0_8 = arith.constant 0 : index
    %24 = vector.load %arg4[%c0_6, %c0_7, %c0_8] : memref<1x32x32xf32, #tpu.memory_space<vmem>>, vector<1x32x32xf32>
    %25 = vector.shape_cast %24 : vector<1x32x32xf32> to vector<32x32xf32>
    %26 = arith.addf %25, %22 : vector<32x32xf32>
    %c0_9 = arith.constant 0 : index
    %c0_10 = arith.constant 0 : index
    %c0_11 = arith.constant 0 : index
    %27 = vector.load %arg4[%c0_9, %c0_10, %c0_11] : memref<1x32x32xf32, #tpu.memory_space<vmem>>, vector<1x32x32xf32>
    %28 = vector.shape_cast %27 : vector<1x32x32xf32> to vector<32x32xf32>
    %29 = vector.shape_cast %26 : vector<32x32xf32> to vector<1x32x32xf32>
    tpu.vector_store %arg4[%c0_9, %c0_10, %c0_11], %29 {strides = array<i32>} : memref<1x32x32xf32, #tpu.memory_space<vmem>>, vector<1x32x32xf32>,
    %c0_12 = arith.constant 0 : index
    %c0_13 = arith.constant 0 : index
    %c0_14 = arith.constant 0 : index
    %30 = vector.load %arg5[%c0_12, %c0_13, %c0_14] : memref<1x4x32xf32, #tpu.memory_space<vmem>>, vector<1x4x32xf32>
    %31 = vector.shape_cast %30 : vector<1x4x32xf32> to vector<4x32xf32>
    %32 = arith.addf %31, %23 : vector<4x32xf32>
    %c0_15 = arith.constant 0 : index
    %c0_16 = arith.constant 0 : index
    %c0_17 = arith.constant 0 : index
    %33 = vector.load %arg5[%c0_15, %c0_16, %c0_17] : memref<1x4x32xf32, #tpu.memory_space<vmem>>, vector<1x4x32xf32>
    %34 = vector.shape_cast %33 : vector<1x4x32xf32> to vector<4x32xf32>
    %35 = vector.shape_cast %32 : vector<4x32xf32> to vector<1x4x32xf32>
    tpu.vector_store %arg5[%c0_15, %c0_16, %c0_17], %35 {strides = array<i32>} : memref<1x4x32xf32, #tpu.memory_space<vmem>>, vector<1x4x32xf32>,
    return
  }
  func.func @transform_0(%arg0: i32, %arg1: i32) -> (i32, i32) {
    %c1_i32 = arith.constant 1 : i32
    %0 = arith.muli %arg0, %c1_i32 : i32
    %1 = arith.addi %0, %arg1 : i32
    %c0_i32 = arith.constant 0 : i32
    %c0_i32_0 = arith.constant 0 : i32
    return %1, %c0_i32 : i32, i32
  }
  func.func @transform_1(%arg0: i32, %arg1: i32) -> (i32, i32) {
    %c1_i32 = arith.constant 1 : i32
    %0 = arith.muli %arg0, %c1_i32 : i32
    %1 = arith.addi %0, %arg1 : i32
    %c0_i32 = arith.constant 0 : i32
    %c0_i32_0 = arith.constant 0 : i32
    return %c0_i32, %1 : i32, i32
  }
  func.func @transform_2(%arg0: i32, %arg1: i32) -> (i32, i32, i32) {
    %c0_i32 = arith.constant 0 : i32
    %c0_i32_0 = arith.constant 0 : i32
    %c0_i32_1 = arith.constant 0 : i32
    return %arg0, %c0_i32, %c0_i32_0 : i32, i32, i32
  }
  func.func @transform_3(%arg0: i32, %arg1: i32) -> (i32, i32, i32) {
    %c0_i32 = arith.constant 0 : i32
    %c0_i32_0 = arith.constant 0 : i32
    %c0_i32_1 = arith.constant 0 : i32
    return %arg0, %c0_i32, %c0_i32_0 : i32, i32, i32
  }
}

</mosaic_0001>

<bundles_post_ra>
// kernel: tpu_custom_call.1
= control target key start
LH: loop header
LB: loop body
LE: loop exit
PB: predicated region body
PF: predicated region fallthrough
CT: control target
= control target key end

     0   :  { %9 = vsyncpa [#allocation3], 0  ;;  %s3695_s0 = inlined_call_operand.vmem [shape: f32[1000,32], index: 0, kind: input, shape index: {}]   ;;  %s3696_s1 = inlined_call_operand.vmem [shape: s32[1,1000], index: 1, kind: input, shape index: {}]   ;;  %s3697_s2 = inlined_call_operand.hbm [shape: f32[1,32,32], index: 2, kind: output, shape index: {0}]   ;;  %s3698_s3 = inlined_call_operand.hbm [shape: f32[1,4,32], index: 3, kind: output, shape index: {1}]  }
   0x1   :  { %v2492_v0 = vld [vmem:[%s3695_s0] sm:$0xff]  ;;  %v2502_v2 = vld [vmem:[%s3695_s0 + $0x8] sm:$0xff]  ;;  %v2516_v6 = vld [vmem:[%s3695_s0 + $0x10] sm:$0xff] }
   0x2   :  { %v2497_v1 = vld [vmem:[%s3695_s0 + $0x80] sm:$0xff]  ;;  %v2509_v4 = vld [vmem:[%s3695_s0 + $0x88] sm:$0xff]  ;;  %v2521_v7 = vld [vmem:[%s3695_s0 + $0x90] sm:$0xff] }
   0x3   :  { %v2225_v3 = vpack.i.bf16 %v2492_v0, %v2497_v1  ;;  %v2227_v5 = vpack.i.bf16 %v2502_v2, %v2509_v4  ;;  %v2526_v8 = vld [vmem:[%s3695_s0 + $0x100] sm:$0xff]  ;;  %v2538_v11 = vld [vmem:[%s3695_s0 + $0x108] sm:$0xff]  ;;  %v2229_v13 = vpack.i.bf16 %v2516_v6, %v2521_v7  ;;  %v2550_v14 = vld [vmem:[%s3695_s0 + $0x18] sm:$0xff] }
   0x4   :  { %v2531_v9 = vld [vmem:[%s3695_s0 + $0x180] sm:$0xff]  ;;  %v2543_v12 = vld [vmem:[%s3695_s0 + $0x188] sm:$0xff]  ;;  %v2555_v15 = vld [vmem:[%s3695_s0 + $0x98] sm:$0xff] }
   0x5   :  { %2226 = vxpose.xlu0.b32.start [1/16] (narrow) %v2225_v3, 32  ;;  %v2277_v10 = vpack.i.bf16 %v2526_v8, %v2531_v9  ;;  %v2279_v16 = vpack.i.bf16 %v2538_v11, %v2543_v12  ;;  %v2562_v17 = vld [vmem:[%s3695_s0 + $0x110] sm:$0xff]  ;;  %v2231_v19 = vpack.i.bf16 %v2550_v14, %v2555_v15  ;;  %v2574_v20 = vld [vmem:[%s3695_s0 + $0x20] sm:$0xff]  ;;  %v2586_v23 = vld [vmem:[%s3695_s0 + $0x118] sm:$0xff] }
   0x6   :  { %v2567_v18 = vld [vmem:[%s3695_s0 + $0x190] sm:$0xff]  ;;  %v2579_v21 = vld [vmem:[%s3695_s0 + $0xa0] sm:$0xff]  ;;  %v2591_v24 = vld [vmem:[%s3695_s0 + $0x198] sm:$0xff] }
   0x7   :  { %2278 = vxpose.xlu1.b32.start [1/16] (narrow) %v2277_v10, 32  ;;  %v2281_v22 = vpack.i.bf16 %v2562_v17, %v2567_v18  ;;  %3741 = vst [vmem:[#allocation8_spill] sm:$0xff] %v2591_v24  ;;  %v2233_v25 = vpack.i.bf16 %v2574_v20, %v2579_v21  ;;  %v2598_v26 = vld [vmem:[%s3695_s0 + $0x28] sm:$0xff]  ;;  %v2283_v28 = vpack.i.bf16 %v2586_v23, %v2591_v24  ;;  %v2610_v29 = vld [vmem:[%s3695_s0 + $0xf8] sm:$0xff]  ;;  %v2615_v30 = vld [vmem:[%s3695_s0 + $0x120] sm:$0xff] }
   0x8   :  { %v2603_v27 = vld [vmem:[%s3695_s0 + $0xa8] sm:$0xff]  ;;  %3742 = vst [vmem:[#allocation9_spill] sm:$0xff] %v2610_v29  ;;  %v2620_v31 = vld [vmem:[%s3695_s0 + $0x1a0] sm:$0xff]  ;;  %v2625_v32 = vld [vmem:[%s3695_s0 + $0x78] sm:$0xff]  ;;  %1982 = vmatprep.subr.mxu0 %v2610_v29 }
   0x9   :  { %2228 = vxpose.xlu0.b32.cont [2/16] (narrow) %v2227_v5, 32  ;;  %v2631_v33 = vld [vmem:[%s3695_s0 + $0xf0] sm:$0xff]  ;;  %1983 = vmatpush3.msra.mxu0 %v2625_v32  ;;  %v2235_v34 = vpack.i.bf16 %v2598_v26, %v2603_v27  ;;  %v2285_v38 = vpack.i.bf16 %v2615_v30, %v2620_v31  ;;  %v2653_v39 = vld [vmem:[%s3695_s0 + $0xe8] sm:$0xff]  ;;  %v2675_v43 = vld [vmem:[%s3695_s0 + $0xe0] sm:$0xff] }
   0xa   :  { %v2639_v35 = vld [vmem:[%s3695_s0 + $0x70] sm:$0xff]  ;;  %1984 = vmatprep.subr.mxu0 %v2631_v33  ;;  %v2659_v40 = vld [vmem:[%s3695_s0 + $0x128] sm:$0xff]  ;;  %v2681_v45 = vld [vmem:[%s3695_s0 + $0x60] sm:$0xff] }
   0xb   :  { %2280 = vxpose.xlu1.b32.cont [2/16] (narrow) %v2279_v16, 32  ;;  %v83_v36 = vld [vmem:[%s3695_s0 + $0x30] sm:$0xff]  ;;  %1985 = vmatpush3.msra.mxu0 %v2639_v35  ;;  %v2664_v41 = vld [vmem:[%s3695_s0 + $0x1a8] sm:$0xff]  ;;  %v84_v46 = vld [vmem:[%s3695_s0 + $0x38] sm:$0xff] }
   0xc   :  { %v99_v37 = vld [vmem:[%s3695_s0 + $0xb0] sm:$0xff]  ;;  %v2669_v42 = vld [vmem:[%s3695_s0 + $0x68] sm:$0xff]  ;;  %1986 = vmatprep.subr.mxu0 %v2653_v39  ;;  %v100_v47 = vld [vmem:[%s3695_s0 + $0xb8] sm:$0xff]  ;;  %v2287_v49 = vpack.i.bf16 %v2659_v40, %v2664_v41 }
   0xd   :  { %2230 = vxpose.xlu0.b32.cont [3/16] (narrow) %v2229_v13, 32  ;;  %1987 = vmatpush3.msra.mxu0 %v2669_v42  ;;  %v2237_v44 = vpack.i.bf16 %v83_v36, %v99_v37  ;;  %v2693_v48 = vld [vmem:[%s3695_s0 + $0xd8] sm:$0xff]  ;;  %v2706_v51 = vld [vmem:[%s3695_s0 + $0x130] sm:$0xff]  ;;  %v2239_v54 = vpack.i.bf16 %v84_v46, %v100_v47  ;;  %v85_v56 = vld [vmem:[%s3695_s0 + $0x40] sm:$0xff] }
   0xe   :  { %1988 = vmatprep.subr.mxu0 %v2675_v43  ;;  %v2701_v50 = vld [vmem:[%s3695_s0 + $0x58] sm:$0xff]  ;;  %v2711_v52 = vld [vmem:[%s3695_s0 + $0x1b0] sm:$0xff]  ;;  %v101_v57 = vld [vmem:[%s3695_s0 + $0xc0] sm:$0xff] }
   0xf   :  { %2282 = vxpose.xlu1.b32.cont [3/16] (narrow) %v2281_v22, 32  ;;  %1989 = vmatpush3.msra.mxu0 %v2681_v45  ;;  %v103_v53 = vld [vmem:[%s3695_s0 + $0xd0] sm:$0xff]  ;;  %v102_v58 = vld [vmem:[%s3695_s0 + $0xc8] sm:$0xff]  ;;  %v2289_v59 = vpack.i.bf16 %v2706_v51, %v2711_v52  ;;  %v2738_v61 = vld [vmem:[%s3695_s0 + $0x138] sm:$0xff]  ;;  %v2241_v63 = vpack.i.bf16 %v85_v56, %v101_v57 }
  0x10   :  { %1990 = vmatprep.subr.mxu0 %v2693_v48  ;;  %v87_v55 = vld [vmem:[%s3695_s0 + $0x50] sm:$0xff]  ;;  %v86_v60 = vld [vmem:[%s3695_s0 + $0x48] sm:$0xff]  ;;  %v2743_v62 = vld [vmem:[%s3695_s0 + $0x1b8] sm:$0xff] }
  0x11   :  { %2232 = vxpose.xlu0.b32.cont [4/16] (narrow) %v2231_v19, 32  ;;  %1991 = vmatpush3.msra.mxu0 %v2701_v50  ;;  %v2291_v3 = vpack.i.bf16 %v2738_v61, %v2743_v62  ;;  %v2750_v5 = vld [vmem:[%s3695_s0 + $0x140] sm:$0xff]  ;;  %v2243_v13 = vpack.i.bf16 %v86_v60, %v102_v58  ;;  %v2762_v19 = vld [vmem:[%s3695_s0 + $0x148] sm:$0xff] }
  0x12   :  { %1992 = vmatprep.subr.mxu0 %v103_v53  ;;  %v2755_v10 = vld [vmem:[%s3695_s0 + $0x1c0] sm:$0xff]  ;;  %v2767_v22 = vld [vmem:[%s3695_s0 + $0x1c8] sm:$0xff] }
  0x13   :  { %2284 = vxpose.xlu1.b32.cont [4/16] (narrow) %v2283_v28, 32  ;;  %1993 = vmatpush3.msra.mxu0 %v87_v55  ;;  %v2293_v16 = vpack.i.bf16 %v2750_v5, %v2755_v10  ;;  %v2245_v28 = vpack.i.bf16 %v87_v55, %v103_v53 }
  0x14   :  { %1994 = vmatprep.subr.mxu0 %v102_v58 }
  0x15   :  { %2234 = vxpose.xlu0.b32.cont [5/16] (narrow) %v2233_v25, 32  ;;  %1995 = vmatpush3.msra.mxu0 %v86_v60  ;;  %v3713_v25 = vmov 0.0  }
  0x16   :  { %1996 = vmatprep.subr.mxu0 %v101_v57  ;;  %1545 = vmatprep.subr.mxu1 %v3713_v25 }
  0x17   :  { %2286 = vxpose.xlu1.b32.cont [5/16] (narrow) %v2285_v38, 32  ;;  %1997 = vmatpush3.msra.mxu0 %v85_v56 }
  0x18   :  { %1998 = vmatprep.subr.mxu0 %v100_v47 }
  0x19   :  { %2236 = vxpose.xlu0.b32.cont [6/16] (narrow) %v2235_v34, 32  ;;  %1999 = vmatpush3.msra.mxu0 %v84_v46  ;;  %v2295_v34 = vpack.i.bf16 %v2762_v19, %v2767_v22 }
  0x1a   :  { %2000 = vmatprep.subr.mxu0 %v99_v37 }
  0x1b   :  { %2288 = vxpose.xlu1.b32.cont [6/16] (narrow) %v2287_v49, 32  ;;  %2001 = vmatpush3.msra.mxu0 %v83_v36  ;;  %v2779_v36 = vld [vmem:[%s3695_s0 + $0x378] sm:$0xff] }
  0x1c   :  { %2002 = vmatprep.subr.mxu0 %v2603_v27  ;;  %3743 = vst [vmem:[#allocation10_spill] sm:$0xff] %v2779_v36  ;;  %v2784_v27 = vld [vmem:[%s3695_s0 + $0x150] sm:$0xff]  ;;  %1546 = vmatpush1.msra.mxu1 %v2779_v36 }
  0x1d   :  { %2238 = vxpose.xlu0.b32.cont [7/16] (narrow) %v2237_v44, 32  ;;  %2003 = vmatpush3.msra.mxu0 %v2598_v26 }
  0x1e   :  { %2004 = vmatprep.subr.mxu0 %v2579_v21  ;;  %v2789_v21 = vld [vmem:[%s3695_s0 + $0x1d0] sm:$0xff] }
  0x1f   :  { %2290 = vxpose.xlu1.b32.cont [7/16] (narrow) %v2289_v59, 32  ;;  %2005 = vmatpush3.msra.mxu0 %v2574_v20 }
  0x20   :  { %2006 = vmatprep.subr.mxu0 %v2555_v15 }
  0x21   :  { %2240 = vxpose.xlu0.b32.cont [8/16] (narrow) %v2239_v54, 32 }
  0x23   :  { %2292 = vxpose.xlu1.b32.cont [8/16] (narrow) %v2291_v3, 32 }
  0x25   :  { %2242 = vxpose.xlu0.b32.cont [9/16] (narrow) %v2241_v63, 32 }
  0x27   :  { %2294 = vxpose.xlu1.b32.cont [9/16] (narrow) %v2293_v16, 32 }
  0x29   :  { %2244 = vxpose.xlu0.b32.cont [10/16] (narrow) %v2243_v13, 32 }
  0x2a   :  { %10 = vsyncpa [#allocation5], 0  ;;  %2007 = vmatpush3.msra.mxu0 %v2550_v14  ;;  %1547 = vmatprep.subr.mxu1 %v3713_v25  ;;  %v2247_v20 = vpack.i.bf16 %v2701_v50, %v2693_v48  ;;  %v2297_v26 = vpack.i.bf16 %v2784_v27, %v2789_v21  ;;  %v2804_v15 = vld [vmem:[%s3695_s0 + $0x370] sm:$0xff]  ;;  %v2809_v14 = vld [vmem:[%s3695_s0 + $0x158] sm:$0xff]  ;;  %v2253_v47 = vpack.i.bf16 %v2639_v35, %v2631_v33  ;;  %vm70_vm8 = vcmask 261120  }
  0x2b   :  { %2008 = vmatprep.subr.mxu0 %v2521_v7  ;;  %2296 = vxpose.xlu1.b32.cont [10/16] (narrow) %v2295_v34, 32  ;;  %3744 = vst [vmem:[#allocation11_spill] sm:$0xff] %v2804_v15  ;;  %v2814_v7 = vld [vmem:[%s3695_s0 + $0x1d8] sm:$0xff]  ;;  %v2844_v38 = vld [vmem:[%s3695_s0 + $0x1e0] sm:$0xff]  ;;  %v2868_v46 = vld [vmem:[%s3695_s0 + $0x168] sm:$0xff]  ;;  %v2255_v53 = vpack.i.bf16 %v2625_v32, %v2610_v29  ;;  %vm75_vm9 = vcmask 257024  }
  0x2c   :  { %2009 = vmatpush3.msra.mxu0 %v2516_v6  ;;  %1548 = vmatpush1.msra.mxu1 %v2804_v15  ;;  %v2249_v6 = vpack.i.bf16 %v2681_v45, %v2675_v43  ;;  %v2299_v37 = vpack.i.bf16 %v2809_v14, %v2814_v7  ;;  %v2251_v43 = vpack.i.bf16 %v2669_v42, %v2653_v39  ;;  %v2862_v45 = vld [vmem:[%s3695_s0 + $0x358] sm:$0xff]  ;;  %v2873_v39 = vld [vmem:[%s3695_s0 + $0x1e8] sm:$0xff]  ;;  %v2879_v42 = vld [vmem:[%s3695_s0 + $0x350] sm:$0xff] }
  0x2d   :  { %2246 = vxpose.xlu0.b32.cont [11/16] (narrow) %v2245_v28, 32  ;;  %2010 = vmatprep.subr.mxu0 %v2509_v4  ;;  %v2828_v4 = vld [vmem:[%s3695_s0 + $0x1f8] sm:$0xff]  ;;  %3747 = vst [vmem:[#allocation14_spill] sm:$0xff] %v2862_v45  ;;  %3748 = vst [vmem:[#allocation15_spill] sm:$0xff] %v2879_v42  ;;  %v2303_v48 = vpack.i.bf16 %v2868_v46, %v2873_v39  ;;  %v2890_v49 = vld [vmem:[%s3695_s0 + $0x348] sm:$0xff] }
  0x2e   :  { %2011 = vmatpush3.msra.mxu0 %v2502_v2  ;;  %1549 = vmatprep.subr.mxu1 %v3713_v25  ;;  %v2834_v2 = vld [vmem:[%s3695_s0 + $0x368] sm:$0xff]  ;;  %3749 = vst [vmem:[#allocation16_spill] sm:$0xff] %v2890_v49  ;;  %v2896_v50 = vld [vmem:[%s3695_s0 + $0x170] sm:$0xff]  ;;  %v2907_v35 = vld [vmem:[%s3695_s0 + $0x340] sm:$0xff] }
  0x2f   :  { %2012 = vmatprep.subr.mxu0 %v2497_v1  ;;  %2298 = vxpose.xlu1.b32.cont [11/16] (narrow) %v2297_v26, 32  ;;  %3745 = vst [vmem:[#allocation12_spill] sm:$0xff] %v2834_v2  ;;  %v2839_v1 = vld [vmem:[%s3695_s0 + $0x160] sm:$0xff]  ;;  %v2901_v33 = vld [vmem:[%s3695_s0 + $0x1f0] sm:$0xff]  ;;  %3750 = vst [vmem:[#allocation17_spill] sm:$0xff] %v2907_v35 }
  0x30   :  { %2013 = vmatpush3.msra.mxu0 %v2492_v0  ;;  %1550 = vmatpush1.msra.mxu1 %v2834_v2  ;;  %v2851_v0 = vld [vmem:[%s3695_s0 + $0x360] sm:$0xff]  ;;  %v2301_v44 = vpack.i.bf16 %v2839_v1, %v2844_v38  ;;  %v2305_v54 = vpack.i.bf16 %v2896_v50, %v2901_v33  ;;  %v2918_v55 = vld [vmem:[%s3695_s0 + $0x338] sm:$0xff]  ;;  %v2930_v32 = vld [vmem:[%s3695_s0 + $0x330] sm:$0xff] }
  0x31   :  { %2248 = vxpose.xlu0.b32.cont [12/16] (narrow) %v2247_v20, 32  ;;  %2026 = vmatprep.subr.mxu0 %v2828_v4  ;;  %3746 = vst [vmem:[#allocation13_spill] sm:$0xff] %v2851_v0  ;;  %3751 = vst [vmem:[#allocation18_spill] sm:$0xff] %v2918_v55  ;;  %v2924_v56 = vld [vmem:[%s3695_s0 + $0x178] sm:$0xff]  ;;  %v2937_v57 = vld [vmem:[%s3695_s0 + $0x380] sm:$0xff] }
  0x32   :  { %1551 = vmatprep.subr.mxu1 %v3713_v25  ;;  %3752 = vst [vmem:[#allocation19_spill] sm:$0xff] %v2930_v32  ;;  %3753 = vst [vmem:[#allocation20_spill] sm:$0xff] %v2937_v57  ;;  %v2307_v58 = vpack.i.bf16 %v2924_v56, %v2828_v4  ;;  %v2944_v59 = vld [vmem:[%s3695_s0 + $0x328] sm:$0xff]  ;;  %v2950_v60 = vld [vmem:[%s3695_s0 + $0x280] sm:$0xff] }
  0x33   :  { %1552 = vmatpush1.msra.mxu1 %v2851_v0  ;;  %2300 = vxpose.xlu1.b32.cont [12/16] (narrow) %v2299_v37, 32  ;;  %3754 = vst [vmem:[#allocation21_spill] sm:$0xff] %v2944_v59  ;;  %3755 = vst [vmem:[#allocation22_spill] sm:$0xff] %v2950_v60  ;;  %v2955_v63 = vld [vmem:[%s3695_s0 + $0x300] sm:$0xff]  ;;  %v2969_v13 = vld [vmem:[%s3695_s0 + $0x388] sm:$0xff] }
  0x34   :  { %1553 = vmatprep.subr.mxu1 %v3713_v25  ;;  %3756 = vst [vmem:[#allocation23_spill] sm:$0xff] %v2955_v63  ;;  %v2961_v3 = vld [vmem:[%s3695_s0 + $0x320] sm:$0xff]  ;;  %3758 = vst [vmem:[#allocation25_spill] sm:$0xff] %v2969_v13  ;;  %v2329_v16 = vpack.i.bf16 %v2950_v60, %v2955_v63  ;;  %v2976_v28 = vld [vmem:[%s3695_s0 + $0x318] sm:$0xff] }
  0x35   :  { %2250 = vxpose.xlu0.b32.cont [13/16] (narrow) %v2249_v6, 32  ;;  %1554 = vmatpush1.msra.mxu1 %v2862_v45  ;;  %3757 = vst [vmem:[#allocation24_spill] sm:$0xff] %v2961_v3  ;;  %3759 = vst [vmem:[#allocation26_spill] sm:$0xff] %v2976_v28  ;;  %v2982_v34 = vld [vmem:[%s3695_s0 + $0x288] sm:$0xff]  ;;  %v2993_v26 = vld [vmem:[%s3695_s0 + $0x310] sm:$0xff] }
  0x36   :  { %1555 = vmatprep.subr.mxu1 %v3713_v25  ;;  %3760 = vst [vmem:[#allocation27_spill] sm:$0xff] %v2982_v34  ;;  %v2987_v20 = vld [vmem:[%s3695_s0 + $0x308] sm:$0xff]  ;;  %3762 = vst [vmem:[#allocation29_spill] sm:$0xff] %v2993_v26  ;;  %v3001_v6 = vld [vmem:[%s3695_s0 + $0x390] sm:$0xff] }
  0x37   :  { %1556 = vmatpush1.msra.mxu1 %v2879_v42  ;;  %2302 = vxpose.xlu1.b32.cont [13/16] (narrow) %v2301_v44, 32  ;;  %3761 = vst [vmem:[#allocation28_spill] sm:$0xff] %v2987_v20  ;;  %3763 = vst [vmem:[#allocation30_spill] sm:$0xff] %v3001_v6  ;;  %v2331_v37 = vpack.i.bf16 %v2982_v34, %v2987_v20  ;;  %v3018_v44 = vld [vmem:[%s3695_s0 + $0x398] sm:$0xff]  ;;  %v3085_v29 = vld [vmem:[%s3695_s0 + $0x2a8] sm:$0xff] }
  0x38   :  { %1557 = vmatprep.subr.mxu1 %v3713_v25  ;;  %3765 = vst [vmem:[#allocation32_spill] sm:$0xff] %v3018_v44  ;;  %v3091_v60 = vld [vmem:[%s3695_s0 + $0x3b8] sm:$0xff]  ;;  %v3107_v34 = vld [vmem:[%s3695_s0 + $0x2b0] sm:$0xff] }
  0x39   :  { %2252 = vxpose.xlu0.b32.cont [14/16] (narrow) %v2251_v43, 32  ;;  %1558 = vmatpush1.msra.mxu1 %v2890_v49  ;;  %v3009_v43 = vld [vmem:[%s3695_s0 + $0x290] sm:$0xff]  ;;  %3773 = vst [vmem:[#allocation40_spill] sm:$0xff] %v3091_v60 }
  0x3a   :  { %1559 = vmatprep.subr.mxu1 %v3713_v25  ;;  %3764 = vst [vmem:[#allocation31_spill] sm:$0xff] %v3009_v43 }
  0x3b   :  { %1560 = vmatpush1.msra.mxu1 %v2907_v35  ;;  %2304 = vxpose.xlu1.b32.cont [14/16] (narrow) %v2303_v48, 32  ;;  %v3025_v48 = vld [vmem:[%s3695_s0 + $0x3e0] sm:$0xff] }
  0x3c   :  { %1561 = vmatprep.subr.mxu1 %v3713_v25  ;;  %3766 = vst [vmem:[#allocation33_spill] sm:$0xff] %v3025_v48 }
  0x3d   :  { %2254 = vxpose.xlu0.b32.cont [15/16] (narrow) %v2253_v47, 32  ;;  %1562 = vmatpush1.msra.mxu1 %v2918_v55  ;;  %v2333_v47 = vpack.i.bf16 %v3009_v43, %v2993_v26 }
  0x3e   :  { %1563 = vmatprep.subr.mxu1 %v3713_v25 }
  0x3f   :  { %1564 = vmatpush1.msra.mxu1 %v2930_v32  ;;  %2306 = vxpose.xlu1.b32.cont [15/16] (narrow) %v2305_v54, 32  ;;  %v3037_v54 = vld [vmem:[%s3695_s0 + $0x3d8] sm:$0xff] }
  0x40   :  { %1565 = vmatprep.subr.mxu1 %v3713_v25  ;;  %3767 = vst [vmem:[#allocation34_spill] sm:$0xff] %v3037_v54 }
  0x41   :  { %2256 = vxpose.xlu0.b32.end [16/16] (narrow) %v2255_v53, 32  ;;  %1566 = vmatpush1.msra.mxu1 %v2944_v59  ;;  %v3031_v53 = vld [vmem:[%s3695_s0 + $0x298] sm:$0xff] }
  0x42   :  { %1567 = vmatprep.subr.mxu1 %v3713_v25 }
  0x43   :  { %1568 = vmatpush1.msra.mxu1 %v2961_v3  ;;  %2308 = vxpose.xlu1.b32.end [16/16] (narrow) %v2307_v58, 32  ;;  %v3045_v58 = vld [vmem:[%s3695_s0 + $0x3a0] sm:$0xff] }
  0x44   :  { %1569 = vmatprep.subr.mxu1 %v3713_v25  ;;  %3768 = vst [vmem:[#allocation35_spill] sm:$0xff] %v3045_v58 }
  0x45   :  { %1258 = vxpose.xlu0.b32.start [1/13] (short) (narrow) %v2937_v57, 32  ;;  %1570 = vmatpush1.msra.mxu1 %v2976_v28 }
  0x46   :  { %1571 = vmatprep.subr.mxu1 %v3713_v25 }
  0x47   :  { %1572 = vmatpush1.msra.mxu1 %v2993_v26  ;;  %2330 = vxpose.xlu1.b32.start [1/16] (narrow) %v2329_v16, 32  ;;  %v2335_v16 = vpack.i.bf16 %v3031_v53, %v2976_v28  ;;  %v3077_v26 = vld [vmem:[%s3695_s0 + $0x3c0] sm:$0xff] }
  0x48   :  { %1573 = vmatprep.subr.mxu1 %v3713_v25  ;;  %3772 = vst [vmem:[#allocation39_spill] sm:$0xff] %v3077_v26 }
  0x49   :  { %1259 = vxpose.xlu0.b32.cont [2/13] (short) (narrow) %v2969_v13, 32  ;;  %1574 = vmatpush1.msra.mxu1 %v2987_v20  ;;  %v3072_v20 = vld [vmem:[%s3695_s0 + $0x3a8] sm:$0xff] }
  0x4a   :  { %1575 = vmatprep.subr.mxu1 %v3713_v25  ;;  %3771 = vst [vmem:[#allocation38_spill] sm:$0xff] %v3072_v20 }
  0x4b   :  { %1576 = vmatpush1.msra.mxu1 %v2955_v63  ;;  %2332 = vxpose.xlu1.b32.cont [2/16] (narrow) %v2331_v37, 32  ;;  %v3052_v37 = vld [vmem:[%s3695_s0 + $0x3d0] sm:$0xff]  ;;  %v3058_v63 = vld [vmem:[%s3695_s0 + $0x2a0] sm:$0xff] }
  0x4c   :  { %1583 = vmatprep.subr.mxu1 %v3713_v25  ;;  %3769 = vst [vmem:[#allocation36_spill] sm:$0xff] %v3052_v37  ;;  %v2337_v28 = vpack.i.bf16 %v3058_v63, %v2961_v3  ;;  %v2339_v3 = vpack.i.bf16 %v3085_v29, %v2944_v59  ;;  %v3119_v59 = vld [vmem:[%s3695_s0 + $0x2b8] sm:$0xff] }
  0x4d   :  { %1260 = vxpose.xlu0.b32.cont [3/13] (short) (narrow) %v3001_v6, 32  ;;  %1584 = vmatpush2.msra.mxu1 %v3025_v48 }
  0x4e   :  { %1585 = vmatprep.subr.mxu1 %v3713_v25 }
  0x4f   :  { %1586 = vmatpush2.msra.mxu1 %v3037_v54  ;;  %2334 = vxpose.xlu1.b32.cont [3/16] (narrow) %v2333_v47, 32  ;;  %v3064_v47 = vld [vmem:[%s3695_s0 + $0x3c8] sm:$0xff] }
  0x50   :  { %1587 = vmatprep.subr.mxu1 %v3713_v25  ;;  %3770 = vst [vmem:[#allocation37_spill] sm:$0xff] %v3064_v47 }
  0x51   :  { %1261 = vxpose.xlu0.b32.cont [4/13] (short) (narrow) %v3018_v44, 32  ;;  %1588 = vmatpush2.msra.mxu1 %v3052_v37 }
  0x52   :  { %1589 = vmatprep.subr.mxu1 %v3713_v25 }
  0x53   :  { %1590 = vmatpush2.msra.mxu1 %v3064_v47  ;;  %2336 = vxpose.xlu1.b32.cont [4/16] (narrow) %v2335_v16, 32  ;;  %v3099_v16 = vld [vmem:[%s3695_s0 + $0x3b0] sm:$0xff] }
  0x54   :  { %1591 = vmatprep.subr.mxu1 %v3713_v25  ;;  %3774 = vst [vmem:[#allocation41_spill] sm:$0xff] %v3099_v16 }
  0x55   :  { %1262 = vxpose.xlu0.b32.cont [5/13] (short) (narrow) %v3045_v58, 32  ;;  %1592 = vmatpush2.msra.mxu1 %v3077_v26 }
  0x56   :  { %1593 = vmatprep.subr.mxu1 %v3713_v25 }
  0x57   :  { %1594 = vmatpush2.msra.mxu1 %v3091_v60  ;;  %2338 = vxpose.xlu1.b32.cont [5/16] (narrow) %v2337_v28, 32  ;;  %v2341_v28 = vpack.i.bf16 %v3107_v34, %v2930_v32 }
  0x58   :  { %1595 = vmatprep.subr.mxu1 %v3713_v25 }
  0x59   :  { %1263 = vxpose.xlu0.b32.cont [6/13] (short) (narrow) %v3072_v20, 32  ;;  %1596 = vmatpush2.msra.mxu1 %v3099_v16 }
  0x5a   :  { %1597 = vmatprep.subr.mxu1 %v3713_v25 }
  0x5b   :  { %1598 = vmatpush2.msra.mxu1 %v3072_v20  ;;  %2340 = vxpose.xlu1.b32.cont [6/16] (narrow) %v2339_v3, 32  ;;  %v2343_v3 = vpack.i.bf16 %v3119_v59, %v2918_v55  ;;  %v3131_v20 = vld [vmem:[%s3695_s0 + $0x2c0] sm:$0xff] }
  0x5c   :  { %1599 = vmatprep.subr.mxu1 %v3713_v25  ;;  %v3222_v55 = vld [vmem:[%s3695_s0 + $0x220] sm:$0xff] }
  0x5d   :  { %1264 = vxpose.xlu0.b32.cont [7/13] (short) (narrow) %v3099_v16, 32  ;;  %1600 = vmatpush2.msra.mxu1 %v3045_v58  ;;  %v3188_v58 = vld [vmem:[%s3695_s0 + $0x208] sm:$0xff] }
  0x5e   :  { %1601 = vmatprep.subr.mxu1 %v3713_v25  ;;  %3775 = vst [vmem:[#allocation42_spill] sm:$0xff] %v3188_v58 }
  0x5f   :  { %1602 = vmatpush2.msra.mxu1 %v3018_v44  ;;  %2342 = vxpose.xlu1.b32.cont [7/16] (narrow) %v2341_v28, 32  ;;  %v2345_v28 = vpack.i.bf16 %v3131_v20, %v2907_v35  ;;  %v3143_v44 = vld [vmem:[%s3695_s0 + $0x2c8] sm:$0xff] }
  0x60   :  { %1603 = vmatprep.subr.mxu1 %v3713_v25 }
  0x61   :  { %1265 = vxpose.xlu0.b32.cont [8/13] (short) (narrow) %v3091_v60, 32  ;;  %1604 = vmatpush2.msra.mxu1 %v3001_v6  ;;  %v3201_v60 = vld [vmem:[%s3695_s0 + $0x210] sm:$0xff] }
  0x62   :  { %1605 = vmatprep.subr.mxu1 %v3713_v25  ;;  %3776 = vst [vmem:[#allocation43_spill] sm:$0xff] %v3201_v60 }
  0x63   :  { %1606 = vmatpush2.msra.mxu1 %v2969_v13  ;;  %2344 = vxpose.xlu1.b32.cont [8/16] (narrow) %v2343_v3, 32  ;;  %v2347_v3 = vpack.i.bf16 %v3143_v44, %v2890_v49  ;;  %v3153_v13 = vld [vmem:[%s3695_s0 + $0x2d0] sm:$0xff] }
  0x64   :  { %1607 = vmatprep.subr.mxu1 %v3713_v25  ;;  %v2349_v25 = vpack.i.bf16 %v3153_v13, %v2879_v42 }
  0x65   :  { %1266 = vxpose.xlu0.b32.cont [9/13] (short) (narrow) %v3077_v26, 32  ;;  %1608 = vmatpush2.msra.mxu1 %v2937_v57  ;;  %v3169_v57 = vld [vmem:[%s3695_s0 + $0x2e0] sm:$0xff] }
  0x66   :  { %2149 = vmatprep.subr.mxu1 %v2828_v4  ;;  %v3161_v4 = vld [vmem:[%s3695_s0 + $0x2d8] sm:$0xff]  ;;  %v2353_v6 = vpack.i.bf16 %v3169_v57, %v2851_v0 }
  0x67   :  { %2346 = vxpose.xlu1.b32.cont [9/16] (narrow) %v2345_v28, 32  ;;  %v2351_v28 = vpack.i.bf16 %v3161_v4, %v2862_v45  ;;  %v3246_v45 = vld [vmem:[%s3695_s0 + $0x230] sm:$0xff] }
  0x69   :  { %1267 = vxpose.xlu0.b32.cont [10/13] (short) (narrow) %v3064_v47, 32 }
  0x6b   :  { %2348 = vxpose.xlu1.b32.cont [10/16] (narrow) %v2347_v3, 32  ;;  %v3175_v3 = vld [vmem:[%s3695_s0 + $0x200] sm:$0xff] }
  0x6d   :  { %1268 = vxpose.xlu0.b32.cont [11/13] (short) (narrow) %v3052_v37, 32 }
  0x6f   :  { %2350 = vxpose.xlu1.b32.cont [11/16] (narrow) %v2349_v25, 32  ;;  %v3182_v25 = vld [vmem:[%s3695_s0 + $0x2e8] sm:$0xff] }
  0x70   :  { %v2355_v16 = vpack.i.bf16 %v3182_v25, %v2834_v2 }
  0x71   :  { %1269 = vxpose.xlu0.b32.cont [12/13] (short) (narrow) %v3037_v54, 32  ;;  %v3216_v54 = vld [vmem:[%s3695_s0 + $0x218] sm:$0xff] }
  0x73   :  { %2352 = vxpose.xlu1.b32.cont [12/16] (narrow) %v2351_v28, 32  ;;  %v3195_v28 = vld [vmem:[%s3695_s0 + $0x2f0] sm:$0xff] }
  0x74   :  { %v2357_v26 = vpack.i.bf16 %v3195_v28, %v2804_v15 }
  0x75   :  { %1270 = vxpose.xlu0.b32.end [13/13] (short) (narrow) %v3025_v48, 32 }
  0x77   :  { %2354 = vxpose.xlu1.b32.cont [13/16] (narrow) %v2353_v6, 32  ;;  %v3208_v6 = vld [vmem:[%s3695_s0 + $0x2f8] sm:$0xff] }
  0x78   :  { %v2359_v37 = vpack.i.bf16 %v3208_v6, %v2779_v36  ;;  %v3262_v36 = vld [vmem:[%s3695_s0 + $0x238] sm:$0xff] }
  0x79   :  { %1162 = vxpose.xlu0.b32.start [1/16] (narrow) %v3175_v3, 32 }
  0x7b   :  { %2356 = vxpose.xlu1.b32.cont [14/16] (narrow) %v2355_v16, 32 }
  0x7d   :  { %1163 = vxpose.xlu0.b32.cont [2/16] (narrow) %v3188_v58, 32 }
  0x7f   :  { %2358 = vxpose.xlu1.b32.cont [15/16] (narrow) %v2357_v26, 32 }
  0x81   :  { %1164 = vxpose.xlu0.b32.cont [3/16] (narrow) %v3201_v60, 32  ;;  %v2257_v47 = vpop.trf.xlu0 }
  0x82   :  { %v2258_v16 = vunpack.i.l.bf16 %v2257_v47  ;;  %v2261_v48 = vunpack.i.h.bf16 %v2257_v47 }
  0x83   :  { %2360 = vxpose.xlu1.b32.end [16/16] (narrow) %v2359_v37, 32  ;;  %v3225_v49 = vpop.trf.xlu1 }
  0x84   :  { %1354 = vmatprep.mubr.f32.mxu0 %v2258_v16 }
  0x85   :  { %1165 = vxpose.xlu0.b32.cont [4/16] (narrow) %v3216_v54, 32  ;;  %1355 = vmatmul.mubr.f32.vlgmr.msra.gmra.mxu0 %v2261_v48  ;;  %v2262_v32 = vpop.trf.xlu0  ;;  %v3234_v48 = vld [vmem:[%s3695_s0 + $0x228] sm:$0xff] }
  0x86   :  { %2027 = vmatpush3.msra.mxu0 %v2924_v56  ;;  %v2263_v35 = vunpack.i.l.bf16 %v2262_v32  ;;  %v2266_v47 = vunpack.i.h.bf16 %v2262_v32 }
  0x87   :  { %2028 = vmatprep.subr.mxu0 %v2901_v33  ;;  %v3237_v16 = vpop.trf.xlu1 }
  0x88   :  { %2029 = vmatpush3.msra.mxu0 %v2896_v50  ;;  %1359 = vmatprep.mubr.f32.mxu0 %v2263_v35  ;;  %v208_v35 = vlaneseq }
  0x89   :  { %1166 = vxpose.xlu0.b32.cont [5/16] (narrow) %v3222_v55, 32  ;;  %2030 = vmatprep.subr.mxu0 %v2873_v39  ;;  %v2267_v26 = vpop.trf.xlu0 }
  0x8a   :  { %2031 = vmatpush3.msra.mxu0 %v2868_v46  ;;  %v2268_v37 = vunpack.i.l.bf16 %v2267_v26  ;;  %v2271_v32 = vunpack.i.h.bf16 %v2267_v26  ;;  %v3252_v26 = vshrl.u32 %v208_v35, 7  ;;  %v3282_v35 = vld [vmem:[%s3695_s0 + $0x240] sm:$0xff] }
  0x8b   :  { %2032 = vmatprep.subr.mxu0 %v2844_v38  ;;  %1360 = vmatmul.mubr.f32.gmra.mxu0 %v2266_v47  ;;  %v3249_v2 = vpop.trf.xlu1 }
  0x8c   :  { %2033 = vmatpush3.msra.mxu0 %v2839_v1  ;;  %1364 = vmatprep.mubr.f32.mxu0 %v2268_v37  ;;  %v2310_v37 = vunpack.i.l.bf16 %v3225_v49  ;;  %v980_v15 = vsub.s32 0, %v3252_v26 }
  0x8d   :  { %1167 = vxpose.xlu0.b32.cont [6/16] (narrow) %v3234_v48, 32  ;;  %2034 = vmatprep.subr.mxu0 %v2814_v7  ;;  %v2272_v42 = vpop.trf.xlu0 }
  0x8e   :  { %2035 = vmatpush3.msra.mxu0 %v2809_v14  ;;  %v2273_v0 = vunpack.i.l.bf16 %v2272_v42  ;;  %v2276_v47 = vunpack.i.h.bf16 %v2272_v42 }
  0x8f   :  { %2036 = vmatprep.subr.mxu0 %v2789_v21  ;;  %1365 = vmatmul.mubr.f32.gmra.mxu0 %v2271_v32  ;;  %v3265_v42 = vpop.trf.xlu1 }
  0x90   :  { %2037 = vmatpush3.msra.mxu0 %v2784_v27  ;;  %1369 = vmatprep.mubr.f32.mxu0 %v2273_v0  ;;  %v3271_v0 = vld [vmem:[%s3696_s1] sm:$0xff] }
  0x91   :  { %1168 = vxpose.xlu0.b32.cont [7/16] (narrow) %v3246_v45, 32  ;;  %2038 = vmatprep.subr.mxu0 %v2767_v22  ;;  %v3275_v32 = vrot.slane %v3271_v0, %v980_v15  ;;  %v3294_v15 = vld [vmem:[%s3695_s0 + $0x248] sm:$0xff] }
  0x92   :  { %2039 = vmatpush3.msra.mxu0 %v2762_v19 }
  0x93   :  { %2040 = vmatprep.subr.mxu0 %v2755_v10  ;;  %1370 = vmatmul.mubr.f32.gmra.mxu0 %v2276_v47  ;;  %3777 = vst [vmem:[#allocation44_spill] sm:$0xff] %v3275_v32  ;;  %vm1010_vm0 = vcmp.eq.s32.totalorder %v3252_v26, %v3275_v32  ;;  %v3304_v47 = vld [vmem:[%s3695_s0 + $0x250] sm:$0xff]  ;;  %v3315_v32 = vld [vmem:[%s3695_s0 + $0x258] sm:$0xff] }
  0x94   :  { %2041 = vmatpush3.msra.mxu0 %v2750_v5  ;;  %1439 = vmatprep.mubr.f32.mxu0 %v2310_v37  ;;  %v2313_v37 = vunpack.i.h.bf16 %v3225_v49  ;;  %v2328_v49 = vunpack.i.h.bf16 %v3265_v42 }
  0x95   :  { %1169 = vxpose.xlu0.b32.cont [8/16] (narrow) %v3262_v36, 32  ;;  %2042 = vmatprep.subr.mxu0 %v2743_v62 }
  0x96   :  { %2043 = vmatpush3.msra.mxu0 %v2738_v61 }
  0x97   :  { %2044 = vmatprep.subr.mxu0 %v2711_v52 }
  0x98   :  { %2045 = vmatpush3.msra.mxu0 %v2706_v51 }
  0x99   :  { %1170 = vxpose.xlu0.b32.cont [9/16] (narrow) %v3282_v35, 32  ;;  %2046 = vmatprep.subr.mxu0 %v2664_v41 }
  0x9a   :  { %2047 = vmatpush3.msra.mxu0 %v2659_v40 }
  0x9b   :  { %2048 = vmatprep.subr.mxu0 %v2620_v31 }
  0x9c   :  { %2049 = vmatpush3.msra.mxu0 %v2615_v30 }
  0x9d   :  { %1171 = vxpose.xlu0.b32.cont [10/16] (narrow) %v3294_v15, 32  ;;  %2050 = vmatprep.subr.mxu0 %v2591_v24  ;;  %v2315_v24 = vunpack.i.l.bf16 %v3237_v16 }
  0x9e   :  { %2051 = vmatpush3.msra.mxu0 %v2586_v23  ;;  %v3347_v23 = vld [vmem:[%s3695_s0 + $0x268] sm:$0xff] }
  0x9f   :  { %2052 = vmatprep.subr.mxu0 %v2567_v18  ;;  %v2323_v18 = vunpack.i.h.bf16 %v3249_v2 }
  0xa0   :  { %2053 = vmatpush3.msra.mxu0 %v2562_v17  ;;  %v2318_v17 = vunpack.i.h.bf16 %v3237_v16  ;;  %v996_v16 = vsub.s32 4, %v3252_v26 }
  0xa1   :  { %1172 = vxpose.xlu0.b32.cont [11/16] (narrow) %v3304_v47, 32  ;;  %2054 = vmatprep.subr.mxu0 %v2543_v12  ;;  %v3326_v12 = vld [vmem:[%s3695_s0 + $0x260] sm:$0xff] }
  0xa2   :  { %2055 = vmatpush3.msra.mxu0 %v2538_v11  ;;  %v3331_v11 = vld [vmem:[%s3695_s0 + $0x278] sm:$0xff] }
  0xa3   :  { %2056 = vmatprep.subr.mxu0 %v2531_v9  ;;  %v2320_v9 = vunpack.i.l.bf16 %v3249_v2  ;;  %v1000_v2 = vsub.s32 5, %v3252_v26 }
  0xa4   :  { %2057 = vmatpush3.msra.mxu0 %v2526_v8  ;;  %v3341_v8 = vld [vmem:[%s3695_s0 + $0x270] sm:$0xff] }
  0xa5   :  { %1173 = vxpose.xlu0.b32.cont [12/16] (narrow) %v3315_v32, 32  ;;  %1440 = vmatmul.mubr.f32.vlgmr.msra.gmra.mxu0 %v2313_v37  ;;  %v3363_v37 = vrot.slane %v3271_v0, %v1000_v2 }
  0xa6   :  { %1444 = vmatprep.mubr.f32.mxu0 %v2315_v24  ;;  %2070 = vmatprep.subr.mxu0 %v3208_v6  ;;  %v2325_v24 = vunpack.i.l.bf16 %v3265_v42  ;;  %v3367_v42 = vrot.slane %v3271_v0, %v996_v16 }
  0xa7   :  { %2071 = vmatpush3.msra.mxu0 %v3331_v11  ;;  %vm1015_vm1 = vcmp.eq.s32.totalorder %v3252_v26, %v3363_v37 }
  0xa8   :  { %2072 = vmatprep.subr.mxu0 %v3195_v28  ;;  %3778 = vst [vmem:[#allocation45_spill] sm:$0xff] %v3367_v42  ;;  %vm1014_vm2 = vcmp.eq.s32.totalorder %v3252_v26, %v3367_v42  ;;  %v3780_v42 = vld [vmem:[#allocation22_spill] sm:$0xff] }
  0xa9   :  { %1174 = vxpose.xlu0.b32.cont [13/16] (narrow) %v3326_v12, 32  ;;  %1445 = vmatmul.mubr.f32.gmra.mxu0 %v2318_v17  ;;  %v1004_v17 = vsub.s32 6, %v3252_v26 }
  0xaa   :  { %1449 = vmatprep.mubr.f32.mxu0 %v2320_v9  ;;  %2073 = vmatpush3.msra.mxu0 %v3341_v8 }
  0xab   :  { %2074 = vmatprep.subr.mxu0 %v3182_v25  ;;  %v3380_v9 = vrot.slane %v3271_v0, %v1004_v17 }
  0xac   :  { %2075 = vmatpush3.msra.mxu0 %v3347_v23 }
  0xad   :  { %1175 = vxpose.xlu0.b32.cont [14/16] (narrow) %v3347_v23, 32  ;;  %1450 = vmatmul.mubr.f32.gmra.mxu0 %v2323_v18  ;;  %vm1016_vm3 = vcmp.eq.s32.totalorder %v3252_v26, %v3380_v9 }
  0xae   :  { %1454 = vmatprep.mubr.f32.mxu0 %v2325_v24  ;;  %2076 = vmatprep.subr.mxu0 %v3169_v57 }
  0xaf   :  { %2077 = vmatpush3.msra.mxu0 %v3326_v12 }
  0xb0   :  { %2078 = vmatprep.subr.mxu0 %v3161_v4 }
  0xb1   :  { %1176 = vxpose.xlu0.b32.cont [15/16] (narrow) %v3341_v8, 32  ;;  %1455 = vmatmul.mubr.f32.gmra.mxu0 %v2328_v49  ;;  %v3779_v49 = vld [vmem:[#allocation27_spill] sm:$0xff] }
  0xb2   :  { %2079 = vmatpush3.msra.mxu0 %v3315_v32 }
  0xb3   :  { %2080 = vmatprep.subr.mxu0 %v3153_v13 }
  0xb4   :  { %2081 = vmatpush3.msra.mxu0 %v3304_v47 }
  0xb5   :  { %1177 = vxpose.xlu0.b32.end [16/16] (narrow) %v3331_v11, 32  ;;  %2082 = vmatprep.subr.mxu0 %v3143_v44 }
  0xb6   :  { %2083 = vmatpush3.msra.mxu0 %v3294_v15 }
  0xb7   :  { %2084 = vmatprep.subr.mxu0 %v3131_v20 }
  0xb8   :  { %2085 = vmatpush3.msra.mxu0 %v3282_v35 }
  0xb9   :  { %2086 = vmatprep.subr.mxu0 %v3119_v59 }
  0xba   :  { %2087 = vmatpush3.msra.mxu0 %v3262_v36 }
  0xbb   :  { %2088 = vmatprep.subr.mxu0 %v3107_v34 }
  0xbc   :  { %2089 = vmatpush3.msra.mxu0 %v3246_v45 }
  0xbd   :  { %2090 = vmatprep.subr.mxu0 %v3085_v29 }
  0xbe   :  { %2091 = vmatpush3.msra.mxu0 %v3234_v48 }
  0xbf   :  { %2092 = vmatprep.subr.mxu0 %v3058_v63 }
  0xc0   :  { %2093 = vmatpush3.msra.mxu0 %v3222_v55 }
  0xc1   :  { %v1274_v18 = vpop.trf.xlu0  ;;  %2094 = vmatprep.subr.mxu0 %v3031_v53 }
  0xc2   :  { %1609 = vmatprep.mubr.f32.mxu1 %v1274_v18  ;;  %2095 = vmatpush3.msra.mxu0 %v3216_v54 }
  0xc3   :  { %2096 = vmatprep.subr.mxu0 %v3009_v43  ;;  %v2361_v2 = vpop.trf.xlu1 }
  0xc4   :  { %2097 = vmatpush3.msra.mxu0 %v3201_v60  ;;  %v2362_v16 = vunpack.i.l.bf16 %v2361_v2  ;;  %v2365_v17 = vunpack.i.h.bf16 %v2361_v2  ;;  %v992_v60 = vsub.s32 3, %v3252_v26 }
  0xc5   :  { %v1275_v24 = vpop.trf.xlu0  ;;  %2098 = vmatprep.subr.mxu0 %v3779_v49  ;;  %v3781_v49 = vld [vmem:[#allocation9_spill] sm:$0xff] }
  0xc6   :  { %2099 = vmatpush3.msra.mxu0 %v3188_v58  ;;  %1610 = vmatmul.mubr.f32.vlgmr.msra.gmra.mxu1 %v2362_v16  ;;  %v3790_v16 = vld [vmem:[#allocation16_spill] sm:$0xff] }
  0xc7   :  { %2100 = vmatprep.subr.mxu0 %v3780_v42  ;;  %1524 = vmatprep.mubr.f32.mxu0 %v2365_v17  ;;  %v3402_v43 = vpop.trf.xlu1  ;;  %v2388_v17 = vld [vmem:[%s3695_s0 + $0x78] sm:$0xff] }
  0xc8   :  { %2101 = vmatpush3.msra.mxu0 %v3175_v3  ;;  %2150 = vmatpush3.msra.mxu1 %v2924_v56  ;;  %v2367_v58 = vunpack.i.l.bf16 %v3402_v43  ;;  %v993_v56 = vrot.slane %v3271_v0, %v992_v60  ;;  %v2370_v60 = vunpack.i.h.bf16 %v3402_v43  ;;  %v2389_v43 = vld [vmem:[%s3695_s0 + $0xf0] sm:$0xff] }
  0xc9   :  { %v1276_v18 = vpop.trf.xlu0  ;;  %1614 = vmatprep.mubr.f32.mxu1 %v1275_v24  ;;  %2151 = vmatprep.subr.mxu1 %v2901_v33 }
  0xca   :  { %2114 = vmatprep.subr.mxu0 %v3781_v49  ;;  %2152 = vmatpush3.msra.mxu1 %v2896_v50  ;;  %vm1013_vm4 = vcmp.eq.s32.totalorder %v3252_v26, %v993_v56  ;;  %v3788_v50 = vld [vmem:[#allocation14_spill] sm:$0xff] }
  0xcb   :  { %2153 = vmatprep.subr.mxu1 %v2873_v39  ;;  %1615 = vmatmul.mubr.f32.gmra.mxu1 %v2367_v58  ;;  %v3411_v2 = vpop.trf.xlu1  ;;  %v3789_v58 = vld [vmem:[#allocation15_spill] sm:$0xff]  ;;  %v2390_v56 = vld [vmem:[%s3695_s0 + $0x70] sm:$0xff] }
  0xcc   :  { %2154 = vmatpush3.msra.mxu1 %v2868_v46  ;;  %1619 = vmatprep.mubr.f32.mxu1 %v1276_v18  ;;  %v2372_v33 = vunpack.i.l.bf16 %v3411_v2  ;;  %v2375_v18 = vunpack.i.h.bf16 %v3411_v2  ;;  %v2391_v2 = vld [vmem:[%s3695_s0 + $0xe8] sm:$0xff] }
  0xcd   :  { %2155 = vmatprep.subr.mxu1 %v2844_v38  ;;  %v1277_v24 = vpop.trf.xlu0  ;;  %v3787_v38 = vld [vmem:[#allocation13_spill] sm:$0xff] }
  0xce   :  { %2156 = vmatpush3.msra.mxu1 %v2839_v1  ;;  %v3786_v1 = vld [vmem:[#allocation12_spill] sm:$0xff] }
  0xcf   :  { %2157 = vmatprep.subr.mxu1 %v2814_v7  ;;  %1620 = vmatmul.mubr.f32.gmra.mxu1 %v2372_v33  ;;  %v3419_v39 = vpop.trf.xlu1  ;;  %v2464_v7 = vmov 1.0   ;;  %v3791_v33 = vld [vmem:[#allocation17_spill] sm:$0xff] }
  0xd0   :  { %2158 = vmatpush3.msra.mxu1 %v2809_v14  ;;  %1624 = vmatprep.mubr.f32.mxu1 %v1277_v24  ;;  %v2377_v46 = vunpack.i.l.bf16 %v3419_v39  ;;  %v3785_v14 = vld [vmem:[#allocation11_spill] sm:$0xff] }
  0xd1   :  { %2159 = vmatprep.subr.mxu1 %v2789_v21  ;;  %v3784_v21 = vld [vmem:[#allocation10_spill] sm:$0xff] }
  0xd2   :  { %2160 = vmatpush3.msra.mxu1 %v2784_v27  ;;  %v3783_v27 = vmov 0.0  }
  0xd3   :  { %2161 = vmatprep.subr.mxu1 %v2767_v22  ;;  %1625 = vmatmul.mubr.f32.gmra.mxu1 %v2377_v46  ;;  %v2387_v22 = vld [vmem:[%s3695_s0 + $0x100] sm:$0xff]  ;;  %v984_v46 = vsub.s32 1, %v3252_v26  ;;  %71 = vst.msk [vmem:[#allocation2] sm:$0xff] %vm70_vm8, %v3783_v27  ;;  %72 = vst.msk [vmem:[#allocation2 + $0x8] sm:$0xff] %vm70_vm8, %v3783_v27 }
  0xd4   :  { %2162 = vmatpush3.msra.mxu1 %v2762_v19  ;;  %1976 = vmatprep.mubr.msk.f32.mxu1 %vm1013_vm4, %v2464_v7  ;;  %v988_v19 = vsub.s32 2, %v3252_v26  ;;  %73 = vst.msk [vmem:[#allocation2 + $0x10] sm:$0xff] %vm70_vm8, %v3783_v27  ;;  %74 = vst.msk [vmem:[#allocation2 + $0x18] sm:$0xff] %vm70_vm8, %v3783_v27 }
  0xd5   :  { %2163 = vmatprep.subr.mxu1 %v2755_v10  ;;  %v1008_v10 = vsub.s32 7, %v3252_v26  ;;  %76 = vst.msk [vmem:[#allocation4] sm:$0xf] %vm75_vm9, %v3783_v27 }
  0xd6   :  { %2164 = vmatpush3.msra.mxu1 %v2750_v5  ;;  %v3782_v5 = vld [vmem:[#allocation8_spill] sm:$0xff] }
  0xd7   :  { %2165 = vmatprep.subr.mxu1 %v2743_v62  ;;  %v2386_v62 = vld [vmem:[%s3695_s0 + $0x180] sm:$0xff] }
  0xd8   :  { %2166 = vmatpush3.msra.mxu1 %v2738_v61  ;;  %v2385_v61 = vld [vmem:[%s3695_s0 + $0x108] sm:$0xff] }
  0xd9   :  { %2167 = vmatprep.subr.mxu1 %v2711_v52  ;;  %v2381_v52 = vld [vmem:[%s3695_s0 + $0x118] sm:$0xff] }
  0xda   :  { %2168 = vmatpush3.msra.mxu1 %v2706_v51  ;;  %v989_v51 = vrot.slane %v3271_v0, %v988_v19  ;;  %v2380_v19 = vunpack.i.h.bf16 %v3419_v39  ;;  %v3792_v39 = vld [vmem:[#allocation18_spill] sm:$0xff] }
  0xdb   :  { %2169 = vmatprep.subr.mxu1 %v2664_v41  ;;  %v2384_v41 = vld [vmem:[%s3695_s0 + $0x188] sm:$0xff] }
  0xdc   :  { %2170 = vmatpush3.msra.mxu1 %v2659_v40  ;;  %v2382_v40 = vld [vmem:[%s3695_s0 + $0x190] sm:$0xff]  ;;  %vm1012_vm5 = vcmp.eq.s32.totalorder %v3252_v26, %v989_v51 }
  0xdd   :  { %2171 = vmatprep.subr.mxu1 %v2620_v31  ;;  %v1009_v31 = vrot.slane %v3271_v0, %v1008_v10  ;;  %v2392_v10 = vld [vmem:[%s3695_s0 + $0x68] sm:$0xff] }
  0xde   :  { %2172 = vmatpush3.msra.mxu1 %v2615_v30  ;;  %v2383_v30 = vld [vmem:[%s3695_s0 + $0x110] sm:$0xff] }
  0xdf   :  { %2173 = vmatprep.subr.mxu1 %v3782_v5  ;;  %vm1017_vm6 = vcmp.eq.s32.totalorder %v3252_v26, %v1009_v31  ;;  %v2393_v5 = vld [vmem:[%s3695_s0 + $0xe0] sm:$0xff]  ;;  %v2395_v31 = vld [vmem:[%s3695_s0 + $0xd8] sm:$0xff] }
  0xe0   :  { %2174 = vmatpush3.msra.mxu1 %v2381_v52  ;;  %v2394_v52 = vld [vmem:[%s3695_s0 + $0x60] sm:$0xff] }
  0xe1   :  { %2175 = vmatprep.subr.mxu1 %v2382_v40  ;;  %v985_v40 = vrot.slane %v3271_v0, %v984_v46  ;;  %v2398_v0 = vld [vmem:[%s3695_s0 + $0x50] sm:$0xff]  ;;  %v3798_v46 = vld [vmem:[#allocation28_spill] sm:$0xff] }
  0xe2   :  { %2176 = vmatpush3.msra.mxu1 %v2383_v30  ;;  %v2396_v30 = vld [vmem:[%s3695_s0 + $0x58] sm:$0xff] }
  0xe3   :  { %2177 = vmatprep.subr.mxu1 %v2384_v41  ;;  %v2397_v41 = vld [vmem:[%s3695_s0 + $0xd0] sm:$0xff]  ;;  %vm1011_vm7 = vcmp.eq.s32.totalorder %v3252_v26, %v985_v40  ;;  %v2416_v40 = vld [vmem:[%s3695_s0 + $0x8] sm:$0xff] }
  0xe4   :  { %2178 = vmatpush3.msra.mxu1 %v2385_v61 }
  0xe5   :  { %2179 = vmatprep.subr.mxu1 %v2386_v62  ;;  %v3793_v62 = vld [vmem:[#allocation19_spill] sm:$0xff] }
  0xe6   :  { %2180 = vmatpush3.msra.mxu1 %v2387_v22  ;;  %v2399_v22 = vld [vmem:[%s3695_s0 + $0xc8] sm:$0xff] }
  0xe7   :  { %1840 = vmatprep.subr.mxu1 %v3783_v27  ;;  %1977 = vmatmul.mubr.msk.f32.vlgmr.msra.gmra.mxu1 %vm1012_vm5, %v2464_v7 }
  0xe8   :  { %1841 = vmatpush1.msra.mxu1 %v3784_v21  ;;  %1980 = vmatprep.mubr.msk.f32.mxu1 %vm1017_vm6, %v2464_v7  ;;  %v2400_v21 = vld [vmem:[%s3695_s0 + $0x48] sm:$0xff] }
  0xe9   :  { %1842 = vmatprep.subr.mxu1 %v3783_v27 }
  0xea   :  { %1843 = vmatpush1.msra.mxu1 %v3785_v14  ;;  %v2401_v14 = vld [vmem:[%s3695_s0 + $0xc0] sm:$0xff] }
  0xeb   :  { %1844 = vmatprep.subr.mxu1 %v3783_v27 }
  0xec   :  { %1845 = vmatpush1.msra.mxu1 %v3786_v1  ;;  %v2402_v1 = vld [vmem:[%s3695_s0 + $0x40] sm:$0xff] }
  0xed   :  { %1846 = vmatprep.subr.mxu1 %v3783_v27 }
  0xee   :  { %1847 = vmatpush1.msra.mxu1 %v3787_v38  ;;  %v3794_v38 = vld [vmem:[#allocation21_spill] sm:$0xff] }
  0xef   :  { %1848 = vmatprep.subr.mxu1 %v3783_v27 }
  0xf0   :  { %1849 = vmatpush1.msra.mxu1 %v3788_v50  ;;  %v2403_v50 = vld [vmem:[%s3695_s0 + $0xb8] sm:$0xff] }
  0xf1   :  { %1850 = vmatprep.subr.mxu1 %v3783_v27 }
  0xf2   :  { %1851 = vmatpush1.msra.mxu1 %v3789_v58  ;;  %v3795_v58 = vld [vmem:[#allocation24_spill] sm:$0xff] }
  0xf3   :  { %1852 = vmatprep.subr.mxu1 %v3783_v27 }
  0xf4   :  { %1853 = vmatpush1.msra.mxu1 %v3790_v16  ;;  %v2406_v16 = vld [vmem:[%s3695_s0 + $0x30] sm:$0xff] }
  0xf5   :  { %v1178_v49 = vpop.trf.xlu0  ;;  %1854 = vmatprep.subr.mxu1 %v3783_v27 }
  0xf6   :  { %1525 = vmatmul.mubr.f32.vlgmr.msra.gmra.mxu0 %v1178_v49  ;;  %1855 = vmatpush1.msra.mxu1 %v3791_v33  ;;  %v2405_v49 = vld [vmem:[%s3695_s0 + $0xb0] sm:$0xff]  ;;  %v2410_v33 = vld [vmem:[%s3695_s0 + $0x20] sm:$0xff] }
  0xf7   :  { %2115 = vmatpush3.msra.mxu0 %v2388_v17  ;;  %1529 = vmatprep.mubr.f32.mxu0 %v2370_v60  ;;  %v2404_v60 = vld [vmem:[%s3695_s0 + $0x38] sm:$0xff] }
  0xf8   :  { %2116 = vmatprep.subr.mxu0 %v2389_v43  ;;  %1856 = vmatprep.subr.mxu1 %v3783_v27  ;;  %v3796_v17 = vld [vmem:[#allocation26_spill] sm:$0xff]  ;;  %v2408_v43 = vld [vmem:[%s3695_s0 + $0x28] sm:$0xff] }
  0xf9   :  { %2117 = vmatpush3.msra.mxu0 %v2390_v56  ;;  %v1179_v24 = vpop.trf.xlu0  ;;  %1857 = vmatpush1.msra.mxu1 %v3792_v39  ;;  %v3797_v56 = vld [vmem:[#allocation29_spill] sm:$0xff] }
  0xfa   :  { %2118 = vmatprep.subr.mxu0 %v2391_v2  ;;  %1530 = vmatmul.mubr.f32.gmra.mxu0 %v1179_v24  ;;  %v2409_v24 = vld [vmem:[%s3695_s0 + $0xa0] sm:$0xff]  ;;  %v2411_v2 = vld [vmem:[%s3695_s0 + $0x98] sm:$0xff]  ;;  %v2415_v39 = vld [vmem:[%s3695_s0 + $0x88] sm:$0xff] }
  0xfb   :  { %2119 = vmatpush3.msra.mxu0 %v2392_v10  ;;  %1534 = vmatprep.mubr.f32.mxu0 %v2375_v18  ;;  %v2407_v18 = vld [vmem:[%s3695_s0 + $0xa8] sm:$0xff]  ;;  %v3799_v10 = vld [vmem:[#allocation23_spill] sm:$0xff] }
  0xfc   :  { %2120 = vmatprep.subr.mxu0 %v2393_v5  ;;  %1858 = vmatprep.subr.mxu1 %v3783_v27  ;;  %v2413_v5 = vld [vmem:[%s3695_s0 + $0x90] sm:$0xff] }
  0xfd   :  { %2121 = vmatpush3.msra.mxu0 %v2394_v52  ;;  %v1180_v51 = vpop.trf.xlu0  ;;  %1859 = vmatpush1.msra.mxu1 %v3793_v62  ;;  %v2414_v52 = vld [vmem:[%s3695_s0 + $0x10] sm:$0xff] }
  0xfe   :  { %2122 = vmatprep.subr.mxu0 %v2395_v31  ;;  %1535 = vmatmul.mubr.f32.gmra.mxu0 %v1180_v51  ;;  %v3800_v51 = vld [vmem:[#allocation33_spill] sm:$0xff]  ;;  %v3801_v31 = vld [vmem:[#allocation34_spill] sm:$0xff] }
  0xff   :  { %2123 = vmatpush3.msra.mxu0 %v2396_v30  ;;  %1539 = vmatprep.mubr.f32.mxu0 %v2380_v19  ;;  %v2412_v19 = vld [vmem:[%s3695_s0 + $0x18] sm:$0xff]  ;;  %v2417_v30 = vld [vmem:[%s3695_s0 + $0x80] sm:$0xff]  ;;  %v3804_v62 = vld [vmem:[#allocation37_spill] sm:$0xff] }
 0x100   :  { %2124 = vmatprep.subr.mxu0 %v2397_v41  ;;  %1860 = vmatprep.subr.mxu1 %v3783_v27  ;;  %v2418_v41 = vld [vmem:[%s3695_s0] sm:$0xff]  ;;  %s2465_s0 = smov [#allocation2]  }
 0x101   :  { %2125 = vmatpush3.msra.mxu0 %v2398_v0  ;;  %v1181_v61 = vpop.trf.xlu0  ;;  %1861 = vmatpush1.msra.mxu1 %v3794_v38  ;;  %v3802_v0 = vld [vmem:[#allocation36_spill] sm:$0xff]  ;;  %s1932_s12 = sshll.u32 %s2465_s0, 4  ;;  %s1933_s12 = int_to_ptr.vmem [resolvable:$true] %s1932_s12 }
 0x102   :  { %2126 = vmatprep.subr.mxu0 %v2399_v22  ;;  %1540 = vmatmul.mubr.f32.gmra.mxu0 %v1181_v61  ;;  %v3805_v22 = vld [vmem:[#allocation39_spill] sm:$0xff]  ;;  %s2419_s13 = scalar_lea.vmem %s1933_s12, 512  ;;  %p2424_p1 = scmp.lt.s32.totalorder %s1933_s12, %s1933_s12 }
 0x103   :  { %2127 = vmatpush3.msra.mxu0 %v2400_v21  ;;  %1974 = vmatprep.mubr.msk.f32.mxu0 %vm1011_vm7, %v2464_v7  ;;  %p2420_p0 = scmp.ne.s32.totalorder %s1933_s12, %s2419_s13  ;;  %p2425_p2 = scmp.lt.s32.totalorder %s2419_s13, %s2419_s13 }
 0x104   :  { %2128 = vmatprep.subr.mxu0 %v2401_v14  ;;  %1862 = vmatprep.subr.mxu1 %v3783_v27 }
 0x105   :  { %2129 = vmatpush3.msra.mxu0 %v2402_v1  ;;  %1863 = vmatpush1.msra.mxu1 %v3795_v58  ;;  %p2426_p3 = por %p2425_p2, %p2424_p1 }
 0x106   :  { %2130 = vmatprep.subr.mxu0 %v2403_v50  ;;  %1864 = vmatprep.subr.mxu1 %v3783_v27 }
 0x107   :  { %2131 = vmatpush3.msra.mxu0 %v2404_v60  ;;  %1865 = vmatpush1.msra.mxu1 %v3796_v17  ;;  %p2427_p4 = pnand %p2426_p3, %p2420_p0 }
 0x108   :  { %2132 = vmatprep.subr.mxu0 %v2405_v49  ;;  %1866 = vmatprep.subr.mxu1 %v3783_v27 }
 0x109   :  { %2133 = vmatpush3.msra.mxu0 %v2406_v16  ;;  %1867 = vmatpush1.msra.mxu1 %v3797_v56 }
 0x10a   :  { %2134 = vmatprep.subr.mxu0 %v2407_v18  ;;  %1868 = vmatprep.subr.mxu1 %v3783_v27 }
 0x10b   :  { %2135 = vmatpush3.msra.mxu0 %v2408_v43  ;;  %1869 = vmatpush1.msra.mxu1 %v3798_v46  ;;  %v1910_v46 = vld [vmem:[#allocation2] sm:$0xff] }
 0x10c   :  { %2136 = vmatprep.subr.mxu0 %v2409_v24  ;;  %1870 = vmatprep.subr.mxu1 %v3783_v27 }
 0x10d   :  { %2137 = vmatpush3.msra.mxu0 %v2410_v33  ;;  %1871 = vmatpush1.msra.mxu1 %v3799_v10 }
 0x10e   :  { %2138 = vmatprep.subr.mxu0 %v2411_v2  ;;  %1878 = vmatprep.subr.mxu1 %v3783_v27 }
 0x10f   :  { %2139 = vmatpush3.msra.mxu0 %v2412_v19  ;;  %1879 = vmatpush2.msra.mxu1 %v3800_v51 }
 0x110   :  { %2140 = vmatprep.subr.mxu0 %v2413_v5  ;;  %1880 = vmatprep.subr.mxu1 %v3783_v27 }
 0x111   :  { %2141 = vmatpush3.msra.mxu0 %v2414_v52  ;;  %1881 = vmatpush2.msra.mxu1 %v3801_v31 }
 0x112   :  { %2142 = vmatprep.subr.mxu0 %v2415_v39  ;;  %1882 = vmatprep.subr.mxu1 %v3783_v27 }
 0x113   :  { %2143 = vmatpush3.msra.mxu0 %v2416_v40  ;;  %1883 = vmatpush2.msra.mxu1 %v3802_v0 }
 0x114   :  { %2144 = vmatprep.subr.mxu0 %v2417_v30  ;;  %1884 = vmatprep.subr.mxu1 %v3783_v27  ;;  %v1911_v30 = vld [vmem:[#allocation2 + $0x8] sm:$0xff] }
 0x115   :  { %2145 = vmatpush3.msra.mxu0 %v2418_v41  ;;  %1885 = vmatpush2.msra.mxu1 %v3804_v62 }
 0x116   :  { %1975 = vmatmul.mubr.msk.f32.vlgmr.msra.gmra.mxu0 %vm1010_vm0, %v2464_v7  ;;  %2184 = vmatprep.subr.mxu0 %v3208_v6  ;;  %v3806_v6 = vld [vmem:[#allocation40_spill] sm:$0xff] }
 0x117   :  { %2185 = vmatpush3.msra.mxu0 %v3331_v11  ;;  %1886 = vmatprep.subr.mxu1 %v3783_v27 }
 0x118   :  { %2186 = vmatprep.subr.mxu0 %v3195_v28  ;;  %1887 = vmatpush2.msra.mxu1 %v3805_v22  ;;  %v3807_v28 = vld [vmem:[#allocation41_spill] sm:$0xff] }
 0x119   :  { %2187 = vmatpush3.msra.mxu0 %v3341_v8  ;;  %1888 = vmatprep.subr.mxu1 %v3783_v27 }
 0x11a   :  { %2188 = vmatprep.subr.mxu0 %v3182_v25  ;;  %1889 = vmatpush2.msra.mxu1 %v3806_v6  ;;  %v3808_v25 = vld [vmem:[#allocation38_spill] sm:$0xff] }
 0x11b   :  { %2189 = vmatpush3.msra.mxu0 %v3347_v23  ;;  %1890 = vmatprep.subr.mxu1 %v3783_v27 }
 0x11c   :  { %2190 = vmatprep.subr.mxu0 %v3169_v57  ;;  %1891 = vmatpush2.msra.mxu1 %v3807_v28  ;;  %v3809_v57 = vld [vmem:[#allocation35_spill] sm:$0xff] }
 0x11d   :  { %2191 = vmatpush3.msra.mxu0 %v3326_v12  ;;  %1892 = vmatprep.subr.mxu1 %v3783_v27 }
 0x11e   :  { %2192 = vmatprep.subr.mxu0 %v3161_v4  ;;  %1893 = vmatpush2.msra.mxu1 %v3808_v25  ;;  %v3810_v4 = vld [vmem:[#allocation32_spill] sm:$0xff] }
 0x11f   :  { %2193 = vmatpush3.msra.mxu0 %v3315_v32  ;;  %1894 = vmatprep.subr.mxu1 %v3783_v27 }
 0x120   :  { %2194 = vmatprep.subr.mxu0 %v3153_v13  ;;  %1895 = vmatpush2.msra.mxu1 %v3809_v57  ;;  %v3811_v13 = vld [vmem:[#allocation30_spill] sm:$0xff] }
 0x121   :  { %2195 = vmatpush3.msra.mxu0 %v3304_v47  ;;  %1896 = vmatprep.subr.mxu1 %v3783_v27  ;;  %v1912_v57 = vld [vmem:[#allocation2 + $0x10] sm:$0xff] }
 0x122   :  { %2196 = vmatprep.subr.mxu0 %v3143_v44  ;;  %1897 = vmatpush2.msra.mxu1 %v3810_v4 }
 0x123   :  { %2197 = vmatpush3.msra.mxu0 %v3294_v15  ;;  %1898 = vmatprep.subr.mxu1 %v3783_v27 }
 0x124   :  { %2198 = vmatprep.subr.mxu0 %v3131_v20  ;;  %1978 = vmatprep.mubr.msk.f32.mxu0 %vm1015_vm1, %v2464_v7  ;;  %v3812_v20 = vld [vmem:[#allocation25_spill] sm:$0xff] }
 0x125   :  { %2199 = vmatpush3.msra.mxu0 %v3282_v35  ;;  %1899 = vmatpush2.msra.mxu1 %v3811_v13 }
 0x126   :  { %2200 = vmatprep.subr.mxu0 %v3119_v59  ;;  %1900 = vmatprep.subr.mxu1 %v3783_v27  ;;  %v3813_v59 = vld [vmem:[#allocation20_spill] sm:$0xff] }
 0x127   :  { %2201 = vmatpush3.msra.mxu0 %v3262_v36  ;;  %1901 = vmatpush2.msra.mxu1 %v3812_v20  ;;  %v3815_v36 = vld [vmem:[#allocation43_spill] sm:$0xff] }
 0x128   :  { %2202 = vmatprep.subr.mxu0 %v3107_v34  ;;  %1902 = vmatprep.subr.mxu1 %v3783_v27  ;;  %v3817_v34 = vld [vmem:[#allocation42_spill] sm:$0xff] }
 0x129   :  { %2203 = vmatpush3.msra.mxu0 %v3246_v45  ;;  %1903 = vmatpush2.msra.mxu1 %v3813_v59  ;;  %v3816_v45 = vld [vmem:[#allocation27_spill] sm:$0xff] }
 0x12a   :  { %2204 = vmatprep.subr.mxu0 %v3085_v29  ;;  %1981 = vmatmul.mubr.msk.f32.vlgmr.msra.gmra.mxu1 %vm1016_vm3, %v2464_v7  ;;  %v3814_v29 = vld [vmem:[#allocation31_spill] sm:$0xff] }
 0x12b   :  { %2205 = vmatpush3.msra.mxu0 %v3234_v48 }
 0x12c   :  { %2206 = vmatprep.subr.mxu0 %v3058_v63 }
 0x12d   :  { %2207 = vmatpush3.msra.mxu0 %v3222_v55 }
 0x12e   :  { %2208 = vmatprep.subr.mxu0 %v3031_v53 }
 0x12f   :  { %2209 = vmatpush3.msra.mxu0 %v3216_v54 }
 0x130   :  { %2210 = vmatprep.subr.mxu0 %v3814_v29 }
 0x131   :  { %2211 = vmatpush3.msra.mxu0 %v3815_v36 }
 0x132   :  { %2212 = vmatprep.subr.mxu0 %v3816_v45  ;;  %v1913_v45 = vld [vmem:[#allocation2 + $0x18] sm:$0xff] }
 0x133   :  { %2213 = vmatpush3.msra.mxu0 %v3817_v34 }
 0x134   :  { %2214 = vmatprep.subr.mxu0 %v3780_v42 }
 0x135   :  { %2215 = vmatpush3.msra.mxu0 %v3175_v3 }
 0x136   :  { %1979 = vmatmul.mubr.msk.f32.vlgmr.msra.gmra.mxu0 %vm1014_vm2, %v2464_v7 }
 0x145   :  { %v2014_v55 = vpop.f32.mrf.mxu0 }
 0x147   :  { %v2015_v44 = vpop.f32.mrf.mxu0 }
 0x148   :  { %v2016_v50 = vadd.f32 %v2015_v44, %v2014_v55 }
 0x14b   :  { %v2017_v53 = vpop.f32.mrf.mxu0 }
 0x14d   :  { %v2018_v54 = vpop.f32.mrf.mxu0 }
 0x14e   :  { %v2019_v16 = vadd.f32 %v2018_v54, %v2017_v53 }
 0x14f   :  { %v2020_v48 = vpop.f32.mrf.mxu0 }
 0x151   :  { %v2021_v35 = vpop.f32.mrf.mxu0 }
 0x152   :  { %v2022_v33 = vadd.f32 %v2021_v35, %v2020_v48 }
 0x153   :  { %v2023_v12 = vpop.f32.mrf.mxu0 }
 0x155   :  { %v2024_v23 = vpop.f32.mrf.mxu0 }
 0x156   :  { %v2025_v31 = vadd.f32 %v2024_v23, %v2023_v12 }
 0x165   :  { %v2058_v42 = vpop.f32.mrf.mxu0 }
 0x167   :  { %v2059_v9 = vpop.f32.mrf.mxu0 }
 0x168   :  { %v2060_v60 = vadd.f32 %v2059_v9, %v2058_v42 }
 0x169   :  { %v2061_v7 = vpop.f32.mrf.mxu0 }
 0x16a   :  { %v1442_v17 = vadd.f32 %v2060_v60, %v2016_v50 }
 0x16b   :  { %v2062_v27 = vpop.f32.mrf.mxu0 }
 0x16c   :  { %v2063_v18 = vadd.f32 %v2062_v27, %v2061_v7 }
 0x16d   :  { %v2064_v21 = vpop.f32.mrf.mxu0 }
 0x16e   :  { %v1447_v19 = vadd.f32 %v2063_v18, %v2019_v16 }
 0x16f   :  { %v2065_v14 = vpop.f32.mrf.mxu0 }
 0x170   :  { %v2066_v10 = vadd.f32 %v2065_v14, %v2064_v21 }
 0x171   :  { %v2067_v1 = vpop.f32.mrf.mxu0 }
 0x172   :  { %v1452_v0 = vadd.f32 %v2066_v10, %v2022_v33 }
 0x173   :  { %v2068_v38 = vpop.f32.mrf.mxu0 }
 0x174   :  { %v2069_v61 = vadd.f32 %v2068_v38, %v2067_v1 }
 0x176   :  { %v1457_v13 = vadd.f32 %v2069_v61, %v2025_v31 }
 0x186   :  { %v1611_v3 = vpop.f32.mrf.mxu1 }
 0x188   :  { %v1613_v26 = vpop.f32.mrf.mxu1 }
 0x18b   :  { %v1616_v32 = vpop.f32.mrf.mxu1 }
 0x18d   :  { %v1618_v15 = vpop.f32.mrf.mxu1 }
 0x18f   :  { %v1621_v47 = vpop.f32.mrf.mxu1 }
 0x191   :  { %v1623_v11 = vpop.f32.mrf.mxu1 }
 0x193   :  { %v1626_v8 = vpop.f32.mrf.mxu1 }
 0x195   :  { %v1628_v37 = vpop.f32.mrf.mxu1 }
 0x1b6   :  { %v2102_v58 = vpop.f32.mrf.mxu0 }
 0x1b8   :  { %v2103_v49 = vpop.f32.mrf.mxu0 }
 0x1b9   :  { %v2104_v43 = vadd.f32 %v2103_v49, %v2102_v58 }
 0x1ba   :  { %v2105_v56 = vpop.f32.mrf.mxu0 }
 0x1bb   :  { %v1527_v24 = vadd.f32 %v2104_v43, %v1442_v17 }
 0x1bc   :  { %v2106_v2 = vpop.f32.mrf.mxu0 }
 0x1bd   :  { %v1612_v5 = vadd.f32 %v1611_v3, %v1527_v24  ;;  %v2107_v52 = vadd.f32 %v2106_v2, %v2105_v56 }
 0x1be   :  { %v2108_v51 = vpop.f32.mrf.mxu0 }
 0x1bf   :  { %v1914_v39 = vadd.f32 %v1910_v46, %v1612_v5  ;;  %v1532_v40 = vadd.f32 %v2107_v52, %v1447_v19 }
 0x1c0   :  { %v2109_v41 = vpop.f32.mrf.mxu0 }
 0x1c1   :  { %1919 = vst.msk [vmem:[#allocation2] sm:$0xff] %vm70_vm8, %v1914_v39  ;;  %v1617_v62 = vadd.f32 %v1616_v32, %v1532_v40  ;;  %v2110_v22 = vadd.f32 %v2109_v41, %v2108_v51 }
 0x1c2   :  { %v2111_v6 = vpop.f32.mrf.mxu0 }
 0x1c3   :  { %v1915_v28 = vadd.f32 %v1911_v30, %v1617_v62  ;;  %v1537_v25 = vadd.f32 %v2110_v22, %v1452_v0 }
 0x1c4   :  { %v2112_v4 = vpop.f32.mrf.mxu0 }
 0x1c5   :  { %1920 = vst.msk [vmem:[#allocation2 + $0x8] sm:$0xff] %vm70_vm8, %v1915_v28  ;;  %v1622_v20 = vadd.f32 %v1621_v47, %v1537_v25  ;;  %v2113_v59 = vadd.f32 %v2112_v4, %v2111_v6 }
 0x1c7   :  { %v1916_v29 = vadd.f32 %v1912_v57, %v1622_v20  ;;  %v1542_v36 = vadd.f32 %v2113_v59, %v1457_v13 }
 0x1c9   :  { %1921 = vst.msk [vmem:[#allocation2 + $0x10] sm:$0xff] %vm70_vm8, %v1916_v29  ;;  %v1627_v34 = vadd.f32 %v1626_v8, %v1542_v36 }
 0x1cb   :  { %v1917_v63 = vadd.f32 %v1913_v45, %v1627_v34 }
 0x1cd   :  { %1922 = vst.msk [vmem:[#allocation2 + $0x18] sm:$0xff] %vm70_vm8, %v1917_v63 }
 0x1ce   :  { %2430 = shalt.err (!%p2427_p4)
}
 0x1cf   :  { %s2466_s14 = smov 128   ;;  %s2467_s15 = smov 8   ;;  %v2181_v55 = vpop.f32.mrf.mxu1  ;;  %v1923_v8 = vld [vmem:[#allocation4] sm:$0xf] }
 0x1d0   :  { %1938 = dma.vmem_to_hbm [thread:$0]  %s1933_s12, 512, %s3697_s2, [#allocation3], %s2466_s14, %s2466_s14, %s2467_s15  }
 0x1d1   :  { %v2182_v44 = vpop.f32.mrf.mxu1  ;;  %s2468_s18 = smov [#allocation4]  }
 0x1d2   :  { %v2183_v35 = vadd.f32 %v2182_v44, %v2181_v55  ;;  %s1945_s19 = sshll.u32 %s2468_s18, 4  ;;  %s1946_s19 = int_to_ptr.vmem [resolvable:$true] %s1945_s19 }
 0x1d3   :  { %s2439_s2 = scalar_lea.vmem %s1946_s19, 64  ;;  %p2444_p6 = scmp.lt.s32.totalorder %s1946_s19, %s1946_s19 }
 0x1d4   :  { %p2440_p5 = scmp.ne.s32.totalorder %s1946_s19, %s2439_s2  ;;  %p2445_p7 = scmp.lt.s32.totalorder %s2439_s2, %s2439_s2 }
 0x1d6   :  { %v2146_v54 = vpop.f32.mrf.mxu0  ;;  %p2446_p8 = por %p2445_p7, %p2444_p6 }
 0x1d8   :  { %v2147_v48 = vpop.f32.mrf.mxu0  ;;  %p2447_p9 = pnand %p2446_p8, %p2440_p5 }
 0x1d9   :  { %v2148_v26 = vadd.f32 %v2147_v48, %v2146_v54 }
 0x1db   :  { %v1767_v47 = vadd.f32 %v2183_v35, %v2148_v26 }
 0x1ea   :  { %v1906_v53 = vpop.f32.mrf.mxu1 }
 0x1ec   :  { %v1908_v3 = vpop.f32.mrf.mxu1 }
 0x1f6   :  { %v2216_v32 = vpop.f32.mrf.mxu0 }
 0x1f8   :  { %v2217_v15 = vpop.f32.mrf.mxu0 }
 0x1f9   :  { %v2218_v12 = vadd.f32 %v2217_v15, %v2216_v32 }
 0x1fb   :  { %v1837_v11 = vadd.f32 %v2218_v12, %v1767_v47 }
 0x1fd   :  { %v1907_v23 = vadd.f32 %v1906_v53, %v1837_v11 }
 0x1ff   :  { %v1924_v37 = vadd.f32 %v1923_v8, %v1907_v23 }
 0x201   :  { %1926 = vst.msk [vmem:[#allocation4] sm:$0xf] %vm75_vm9, %v1924_v37 }
 0x202   :  { %2450 = shalt.err (!%p2447_p9)
}
 0x203   :  { %1948 = dma.vmem_to_hbm [thread:$0]  %s1946_s19, 64, %s3698_s3, [#allocation5]  }
 0x204   :  { %2459 = dma.done.wait [#allocation3], 512  }
 0x205   :  { %2460 = vsyncadd [#allocation3], 4294966784 }
 0x206   :  { %2461 = dma.done.wait [#allocation5], 64  }
 0x207   :  { %2462 = vsyncadd [#allocation5], 4294967232 }
 0x208   :  { %1955 = vsyncpa [#allocation3], 1 }
 0x209   :  { %1956 = vsyncpa [#allocation5], 1 }

</bundles_post_ra>
